<compile_context>
chip_gen: v7x
topology: tpu7x:2x2x1
jax: 0.10.0
libtpu: 0.0.40
codegen_flags: <defaults>
</compile_context>

<pallas_src>
import functools

import jax
import jax.numpy as jnp
from jax.experimental import pallas as pl
from jax.experimental.pallas import tpu as pltpu


# ----------------------------------------------------------------------------
# In-kernel building blocks
# ----------------------------------------------------------------------------

def _hidden_features(x_f32, w1_bf16, b1_f32):
    """Pointwise backbone conv + ReLU.  x: (Cin, TN) f32, w1: (H, Cin) bf16.

    MXU operands are bf16 (3-6x fewer vmatmul pushes than f32 emulation),
    accumulation stays f32; returns bf16 features ready for the next matmul.
    """
    xb = x_f32.astype(jnp.bfloat16)
    h = jnp.dot(w1_bf16, xb, preferred_element_type=jnp.float32) + b1_f32
    h = jnp.maximum(h, 0.0)
    return h.astype(jnp.bfloat16)                       # (H, TN) bf16


def _class_logits(h_bf16, w2_bf16, b2_f32):
    """Pixel-decoder pointwise conv -> (nc, TN) f32 class logits."""
    return jnp.dot(w2_bf16, h_bf16, preferred_element_type=jnp.float32) + b2_f32


def _sigmoid(x):
    # Exact 2-class softmax foreground prob: softmax([z0, z1])[1] ==
    # sigmoid(z1 - z0).  exp on the EUP slot, divide via approximate
    # reciprocal (also EUP) -> no VALU divide.
    return pl.reciprocal(1.0 + jnp.exp(-x), approx=True)


# ----------------------------------------------------------------------------
# Kernels
# ----------------------------------------------------------------------------

def _logits_kernel(x_ref, w1_ref, b1_ref, w2_ref, b2_ref, logit_ref):
    """Eval path: fused conv+ReLU+conv -> lane-dense (nc, TN) bf16 logits."""
    h = _hidden_features(x_ref[0], w1_ref[...], b1_ref[...])
    z = _class_logits(h, w2_ref[...], b2_ref[...])
    logit_ref[0] = z.astype(logit_ref.dtype)


def _mask_kernel(x_ref, w1_ref, b1_ref, wd_ref, bd_ref, mask_ref):
    """Inference path: fused conv+ReLU+decision-boundary conv -> int8 fg mask.

    argmax over the 2-class softmax == sign of the logit difference, so the
    second matmul only needs the (1, hidden) weight delta.
    """
    h = _hidden_features(x_ref[0], w1_ref[...], b1_ref[...])
    zd = jnp.dot(wd_ref[...], h, preferred_element_type=jnp.float32) + bd_ref[...]
    # ties -> background, matching `0 < p1 - p0` in the reference.
    mask_ref[0] = (zd > 0.0).astype(mask_ref.dtype)


def _make_train_kernel(tn, n_valid):
    """Train path: logits + per-tile dice partial scalars in one fused pass.

    Each (batch, tile) grid point writes its own partial block, so both grid
    axes can be 'parallel' (v7x megacore shards over tokens even at B=1).
    Tail tokens beyond `n_valid` (T padding) are masked out of the partials.
    """
    def kernel(x_ref, gt_ref, w1_ref, b1_ref, w2_ref, b2_ref,
               logit_ref, part_ref):
        h = _hidden_features(x_ref[0], w1_ref[...], b1_ref[...])
        z = _class_logits(h, w2_ref[...], b2_ref[...])
        logit_ref[0] = z.astype(logit_ref.dtype)

        p_fg = _sigmoid(z[1:2, :] - z[0:1, :])           # (1, TN) softmax fg prob
        y_fg = (gt_ref[0] > 0).astype(jnp.float32)       # (1, TN) fused binarization

        # Mask padded tail tokens (static T closed over; only program_id is dynamic).
        tok = (pl.program_id(1) * tn
               + jax.lax.broadcasted_iota(jnp.int32, (1, tn), 1))
        valid = (tok < n_valid).astype(jnp.float32)
        p_fg = p_fg * valid
        y_fg = y_fg * valid

        # Per-tile lane reductions (XLU slot is idle; kernel is MXU/HBM bound).
        s_inter = jnp.sum(p_fg * y_fg, axis=-1, keepdims=True)   # (1, 1)
        s_psum = jnp.sum(p_fg, axis=-1, keepdims=True)
        s_ysum = jnp.sum(y_fg, axis=-1, keepdims=True)

        # Lane-dense (1, 128) rows with the scalar in lane 0; wrapper just sums.
        lane = jax.lax.broadcasted_iota(jnp.int32, (1, 128), 1)
        part_ref[0, 0:1, :] = jnp.where(lane == 0, s_inter, 0.0)  # fg intersection
        part_ref[0, 1:2, :] = jnp.where(lane == 0, s_psum, 0.0)   # fg prob mass
        part_ref[0, 2:3, :] = jnp.where(lane == 0, s_ysum, 0.0)   # fg target mass

    return kernel


# ----------------------------------------------------------------------------
# pallas_call wrappers
# ----------------------------------------------------------------------------

_MAX_TOKEN_TILE = 32768   # ~0.5 MiB/input buffer at f32; fits every gen incl. v7x


def _tiling(t):
    """Choose a lane-dense token tile and padded token count.

    Tiles as large as possible (<= 32768) to amortize the per-grid-step fixed
    cost; tiles are balanced across the minimum number of grid steps so tail
    padding stays small.  VMEM per step stays < ~6 MiB even at 32768 tokens.
    """
    n_tiles = max(1, -(-t // _MAX_TOKEN_TILE))
    tn = -(-t // n_tiles)
    tn = -(-tn // 128) * 128                     # round up to lane width
    return tn, n_tiles, tn * n_tiles


def _pad_tokens(x, t_pad):
    t = x.shape[-1]
    if t == t_pad:
        return x
    pad = [(0, 0)] * (x.ndim - 1) + [(0, t_pad - t)]
    return jnp.pad(x, pad)


def _weight_specs(hidden, cin, nc):
    # Tiny constant-index weight blocks (resident in VMEM across the grid).
    return [
        pl.BlockSpec((hidden, cin), lambda b, i: (0, 0)),
        pl.BlockSpec((hidden, 1), lambda b, i: (0, 0)),
        pl.BlockSpec((nc, hidden), lambda b, i: (0, 0)),
        pl.BlockSpec((nc, 1), lambda b, i: (0, 0)),
    ]


def fused_logits(x_bct, w1, b1, w2, b2):
    """x_bct: [B, C, T] f32 -> mask logits [B, nc, T] bf16 (one fused kernel)."""
    bsz, cin, t = x_bct.shape
    hidden, nc = w1.shape[0], w2.shape[0]
    tn, n_tiles, t_pad = _tiling(t)
    x_bct = _pad_tokens(x_bct, t_pad)
    # TODO(synk): on v5e, if the input DMA becomes exposed after the bf16 MXU
    # change, add pipeline_mode=pl.Buffered(3) to the x BlockSpec.
    out = pl.pallas_call(
        _logits_kernel,
        out_shape=jax.ShapeDtypeStruct((bsz, nc, t_pad), jnp.bfloat16),
        grid_spec=pltpu.PrefetchScalarGridSpec(
            num_scalar_prefetch=0,
            grid=(bsz, n_tiles),
            in_specs=[pl.BlockSpec((1, cin, tn), lambda b, i: (b, 0, i))]
                     + _weight_specs(hidden, cin, nc),
            out_specs=pl.BlockSpec((1, nc, tn), lambda b, i: (b, 0, i)),
        ),
        compiler_params=pltpu.CompilerParams(
            dimension_semantics=("parallel", "parallel")),
    )(x_bct, w1, b1, w2, b2)
    return out[:, :, :t]


def fused_mask(x_bct, w1, b1, wd, bd):
    """x_bct: [B, C, T] f32 -> [B, 1, T] int8 binary foreground mask."""
    bsz, cin, t = x_bct.shape
    hidden = w1.shape[0]
    tn, n_tiles, t_pad = _tiling(t)
    x_bct = _pad_tokens(x_bct, t_pad)
    out = pl.pallas_call(
        _mask_kernel,
        out_shape=jax.ShapeDtypeStruct((bsz, 1, t_pad), jnp.int8),
        grid_spec=pltpu.PrefetchScalarGridSpec(
            num_scalar_prefetch=0,
            grid=(bsz, n_tiles),
            in_specs=[pl.BlockSpec((1, cin, tn), lambda b, i: (b, 0, i)),
                      pl.BlockSpec((hidden, cin), lambda b, i: (0, 0)),
                      pl.BlockSpec((hidden, 1), lambda b, i: (0, 0)),
                      pl.BlockSpec((1, hidden), lambda b, i: (0, 0)),
                      pl.BlockSpec((1, 1), lambda b, i: (0, 0))],
            out_specs=pl.BlockSpec((1, 1, tn), lambda b, i: (b, 0, i)),
        ),
        compiler_params=pltpu.CompilerParams(
            dimension_semantics=("parallel", "parallel")),
    )(x_bct, w1, b1, wd, bd)
    return out[:, :, :t]


def fused_train(x_bct, gt_b1t, w1, b1, w2, b2):
    """One fused pass producing (logits [B,nc,T] bf16, dice partials).

    Partials layout: [B, 3, n_tiles*128] f32, rows = [fg intersection,
    fg prob sum, fg target sum]; each (batch, tile) grid point owns a distinct
    (1, 3, 128) block with the scalar in lane 0 -> plain sum in the wrapper.
    """
    bsz, cin, t = x_bct.shape
    hidden, nc = w1.shape[0], w2.shape[0]
    tn, n_tiles, t_pad = _tiling(t)
    x_bct = _pad_tokens(x_bct, t_pad)
    gt_b1t = _pad_tokens(gt_b1t, t_pad)
    kernel = _make_train_kernel(tn, t)
    logits, parts = pl.pallas_call(
        kernel,
        out_shape=(jax.ShapeDtypeStruct((bsz, nc, t_pad), jnp.bfloat16),
                   jax.ShapeDtypeStruct((bsz, 3, n_tiles * 128), jnp.float32)),
        grid_spec=pltpu.PrefetchScalarGridSpec(
            num_scalar_prefetch=0,
            grid=(bsz, n_tiles),
            in_specs=[pl.BlockSpec((1, cin, tn), lambda b, i: (b, 0, i)),
                      pl.BlockSpec((1, 1, tn), lambda b, i: (b, 0, i))]
                     + _weight_specs(hidden, cin, nc),
            out_specs=[pl.BlockSpec((1, nc, tn), lambda b, i: (b, 0, i)),
                       pl.BlockSpec((1, 3, 128), lambda b, i: (b, 0, i))],
        ),
        compiler_params=pltpu.CompilerParams(
            # Both axes parallel: partials are per-tile, no resident accumulator.
            dimension_semantics=("parallel", "parallel")),
    )(x_bct, gt_b1t, w1, b1, w2, b2)
    return logits[:, :, :t], parts


# ----------------------------------------------------------------------------
# Model (glue in plain JAX, hot path in Pallas)
# ----------------------------------------------------------------------------

def round_up_pad(x, n_down):
    """Pad D, H, W up to a multiple of 2**n_down (NCDHW). No-op if aligned."""
    m = 2 ** n_down
    _, _, d, h, w = x.shape
    pd, ph, pw = (-d) % m, (-h) % m, (-w) % m
    if pd == 0 and ph == 0 and pw == 0:
        return x
    return jnp.pad(x, ((0, 0), (0, 0), (0, pd), (0, ph), (0, pw)))


class AbstractSemSegModel:
    def __init__(self, in_channels=4, hidden=32, num_classes=2, num_level=2,
                 key=jax.random.PRNGKey(0)):
        self.n_down = num_level - 1
        self.num_classes = num_classes
        self.ch_conf = {'mask': num_classes}
        k1, k2 = jax.random.split(key)
        # Synthetic backbone (pointwise conv + ReLU) and pixel decoder
        # (pointwise conv), channel-on-sublane: (Cout, Cin) / (Cout, 1).
        # Weights stored bf16 (MXU operands); biases stay f32.
        w1 = (jax.random.normal(k1, (hidden, in_channels), jnp.float32)
              * (1.0 / jnp.sqrt(in_channels)))
        w2 = (jax.random.normal(k2, (num_classes, hidden), jnp.float32)
              * (1.0 / jnp.sqrt(hidden)))
        self.w1 = w1.astype(jnp.bfloat16)
        self.b1 = jnp.zeros((hidden, 1), jnp.float32)
        self.w2 = w2.astype(jnp.bfloat16)
        self.b2 = jnp.zeros((num_classes, 1), jnp.float32)
        # Decision-boundary head for the fused inference mask kernel:
        # argmax(softmax([z0, z1])) == (w2[1]-w2[0]) @ h + (b2[1]-b2[0]) > 0.
        self.wd = (w2[1:2] - w2[0:1]).astype(jnp.bfloat16)
        self.bd = jnp.zeros((1, 1), jnp.float32)

    # ---- backbone + decoder (eval path) --------------------------------------
    def forward_features(self, images):
        b, c, d, h, w = images.shape
        x_bct = images.reshape(b, c, d * h * w)      # free reshape, no transpose
        logits = fused_logits(x_bct, self.w1, self.b1, self.w2, self.b2)
        return {'mask': logits.reshape(b, self.num_classes, d, h, w)}

    # ---- DiceLoss(n_class=2) finalization -------------------------------------
    @staticmethod
    def _dice_loss_from_partials(parts, n_tokens):
        # NOTE: dice is computed jointly over the whole batch (same semantics as
        # the previous implementation); a per-sample DiceLoss would reduce parts
        # over axis 2 only and average per batch element.
        s = jnp.sum(parts, axis=(0, 2))                  # (3,) global fg sums
        inter_fg, psum_fg, ysum_fg = s[0], s[1], s[2]
        n = jnp.float32(n_tokens)
        inter_bg = n - psum_fg - ysum_fg + inter_fg      # sum((1-p)(1-y))
        psum_bg = n - psum_fg
        ysum_bg = n - ysum_fg
        eps = 1e-5
        dice_fg = (2.0 * inter_fg + eps) / (psum_fg + ysum_fg + eps)
        dice_bg = (2.0 * inter_bg + eps) / (psum_bg + ysum_bg + eps)
        return 1.0 - 0.5 * (dice_fg + dice_bg)

    def prepare_targets(self, targets):
        # Kept for API fidelity; the binarization (targets > 0) is fused into
        # the train kernel, so this extra HBM pass is NOT on the hot path.
        return (targets > 0).astype(jnp.int32)

    # ---- forward ---------------------------------------------------------------
    def forward(self, inputs, mode='train', inference=False, patchsize=None):
        images = inputs['image']
        depth, height, width = images.shape[-3:]
        results = {}
        outputs = None

        if mode == 'train':
            b, c, d, h, w = images.shape
            x_bct = images.reshape(b, c, d * h * w)
            # Raw labels go straight into the fused kernel (gt > 0 is in-kernel).
            gt_b1t = inputs['instances'].reshape(b, 1, d * h * w)
            logits, parts = fused_train(x_bct, gt_b1t,
                                        self.w1, self.b1, self.w2, self.b2)
            outputs = {'mask': logits.reshape(b, self.num_classes, d, h, w)}
            results['loss'] = {
                'loss_sum': self._dice_loss_from_partials(parts, b * d * h * w)}
        elif patchsize is None:
            images = round_up_pad(images, n_down=self.n_down)
            if not inference:
                outputs = self.forward_features(images)
            # inference=True: handled below by the fully fused mask kernel
            # (logits never written to HBM).
        else:
            # TODO(synk): sliding-window `stitch` patch inference not implemented.
            raise NotImplementedError("patchsize-based stitching not implemented")

        if inference:
            if outputs is not None:
                # Train path: logits already exist; 2-class softmax argmax
                # == plain logit comparison.
                m = outputs['mask']
                fg = (m[:, 1] > m[:, 0]).astype(jnp.int32)
            else:
                b, c, d, h, w = images.shape
                x_bct = images.reshape(b, c, d * h * w)
                fg = fused_mask(x_bct, self.w1, self.b1,
                                self.wd, self.bd).reshape(b, d, h, w)
            # TODO(synk): connected-component labeling (skimage.measure.label,
            # connectivity=3) has no Pallas equivalent; returning the binary
            # foreground mask instead.
            results['instances'] = fg[..., :depth, :height, :width]
        else:
            results.update(outputs)
        return results

    __call__ = forward


# ----------------------------------------------------------------------------
# Demo + lightweight correctness check
# ----------------------------------------------------------------------------

if __name__ == "__main__":
    key = jax.random.PRNGKey(0)
    k_img, k_inst, k_model = jax.random.split(key, 3)

    B, C, D, H, W = 2, 4, 8, 16, 16
    image = jax.random.normal(k_img, (B, C, D, H, W), jnp.float32)
    instances = jax.random.randint(k_inst, (B, D, H, W), 0, 3, jnp.int32)

    model = AbstractSemSegModel(in_channels=C, hidden=32, num_classes=2,
                                num_level=2, key=k_model)

    # --- Train path: one fused kernel -> logits + dice loss --------------------
    train_out = model({'image': image, 'instances': instances}, mode='train')
    loss = jax.block_until_ready(train_out['loss']['loss_sum'])
    assert jnp.isfinite(loss)
    assert train_out['mask'].shape == (B, 2, D, H, W)

    # --- Eval + inference path: fused conv+argmax mask kernel ------------------
    infer_out = model({'image': image}, mode='eval', inference=True)
    inst = jax.block_until_ready(infer_out['instances'])
    assert inst.shape == (B, D, H, W)

    # --- Eval, no inference: padded mask logits --------------------------------
    eval_out = model({'image': image}, mode='eval', inference=False)
    jax.block_until_ready(eval_out['mask'])
    assert eval_out['mask'].shape == (B, 2, D, H, W)

    # --- Plain-JAX reference with matching bf16 operand quantization -----------
    xq = image.astype(jnp.bfloat16).astype(jnp.float32).reshape(B, C, -1)
    w1f = model.w1.astype(jnp.float32)
    w2f = model.w2.astype(jnp.float32)
    h_ref = jnp.maximum(jnp.einsum('oc,bct->bot', w1f, xq) + model.b1[None], 0.0)
    hq = h_ref.astype(jnp.bfloat16).astype(jnp.float32)
    z_ref = jnp.einsum('oh,bht->bot', w2f, hq) + model.b2[None]
    z_ref5 = z_ref.reshape(B, 2, D, H, W)
    logit_err = float(jnp.max(jnp.abs(train_out['mask'].astype(jnp.float32)
                                      - z_ref5)))
    assert logit_err < 5e-2, logit_err

    p_ref = jax.nn.softmax(z_ref, axis=1)
    y1 = (instances.reshape(B, -1) > 0).astype(jnp.float32)
    y_ref = jnp.stack([1.0 - y1, y1], axis=1)
    eps = 1e-5
    inter_r = jnp.sum(p_ref * y_ref, axis=(0, 2))
    psum_r = jnp.sum(p_ref, axis=(0, 2))
    ysum_r = jnp.sum(y_ref, axis=(0, 2))
    loss_ref = 1.0 - jnp.mean((2.0 * inter_r + eps) / (psum_r + ysum_r + eps))
    assert abs(float(loss) - float(loss_ref)) < 1e-2

    mask_ref = (z_ref5[:, 1] > z_ref5[:, 0]).astype(jnp.int32)
    mismatch = float(jnp.mean((inst.astype(jnp.int32) != mask_ref)
                              .astype(jnp.float32)))
    assert mismatch < 0.02, mismatch

    print("KERNEL_OK")
</pallas_src>

<mosaic_0001>
module attributes {stable_mosaic.version = 11 : i64} {
  func.func @kernel(%arg0: i32, %arg1: i32, %arg2: memref<1x4x2048xf32, #tpu.memory_space<vmem>>, %arg3: memref<1x1x2048xi32, #tpu.memory_space<vmem>>, %arg4: memref<32x4xbf16, #tpu.memory_space<vmem>>, %arg5: memref<32x1xf32, #tpu.memory_space<vmem>>, %arg6: memref<2x32xbf16, #tpu.memory_space<vmem>>, %arg7: memref<2x1xf32, #tpu.memory_space<vmem>>, %arg8: memref<1x2x2048xbf16, #tpu.memory_space<vmem>>, %arg9: memref<1x3x128xf32, #tpu.memory_space<vmem>>) attributes {dimension_semantics = [#tpu.dimension_semantics<parallel>, #tpu.dimension_semantics<parallel>], iteration_bounds = array<i64: 2, 1>, scalar_prefetch = 0 : i64, scratch_operands = 0 : i64, tpu.core_type = #tpu.core_type<tc>, window_params = [{transform_indices = @transform_0, window_bounds = array<i64: 1, 4, 2048>}, {transform_indices = @transform_1, window_bounds = array<i64: 1, 1, 2048>}, {pipeline_mode = #tpu.pipeline_mode<synchronous>, transform_indices = @transform_2, window_bounds = array<i64: 32, 4>}, {pipeline_mode = #tpu.pipeline_mode<synchronous>, transform_indices = @transform_3, window_bounds = array<i64: 32, 1>}, {pipeline_mode = #tpu.pipeline_mode<synchronous>, transform_indices = @transform_4, window_bounds = array<i64: 2, 32>}, {pipeline_mode = #tpu.pipeline_mode<synchronous>, transform_indices = @transform_5, window_bounds = array<i64: 2, 1>}, {transform_indices = @transform_6, window_bounds = array<i64: 1, 2, 2048>}, {transform_indices = @transform_7, window_bounds = array<i64: 1, 3, 128>}]} {
    %c0 = arith.constant 0 : index
    %c0_0 = arith.constant 0 : index
    %c0_1 = arith.constant 0 : index
    %0 = vector.load %arg2[%c0, %c0_0, %c0_1] : memref<1x4x2048xf32, #tpu.memory_space<vmem>>, vector<1x4x2048xf32>
    %1 = vector.shape_cast %0 : vector<1x4x2048xf32> to vector<4x2048xf32>
    %c0_2 = arith.constant 0 : index
    %c0_3 = arith.constant 0 : index
    %2 = vector.load %arg4[%c0_2, %c0_3] : memref<32x4xbf16, #tpu.memory_space<vmem>>, vector<32x4xbf16>
    %c0_4 = arith.constant 0 : index
    %c0_5 = arith.constant 0 : index
    %3 = vector.load %arg5[%c0_4, %c0_5] : memref<32x1xf32, #tpu.memory_space<vmem>>, vector<32x1xf32>
    %4 = arith.truncf %1 : vector<4x2048xf32> to vector<4x2048xbf16>
    %cst = arith.constant dense<0.000000e+00> : vector<32x2048xf32>
    %5 = tpu.matmul %2, %4, %cst {dimension_numbers = #tpu.dot_dimension_numbers<[1], [0], [0], [1], [0, 0, 1, 1], [], []>} : vector<32x4xbf16>, vector<4x2048xbf16>, vector<32x2048xf32> -> vector<32x2048xf32>
    %6 = vector.broadcast %3 : vector<32x1xf32> to vector<32x2048xf32>
    %7 = arith.addf %5, %6 : vector<32x2048xf32>
    %cst_6 = arith.constant 0.000000e+00 : f32
    %8 = vector.broadcast %cst_6 : f32 to vector<32x2048xf32>
    %9 = arith.maximumf %7, %8 : vector<32x2048xf32>
    %10 = arith.truncf %9 : vector<32x2048xf32> to vector<32x2048xbf16>
    %c0_7 = arith.constant 0 : index
    %c0_8 = arith.constant 0 : index
    %11 = vector.load %arg6[%c0_7, %c0_8] : memref<2x32xbf16, #tpu.memory_space<vmem>>, vector<2x32xbf16>
    %c0_9 = arith.constant 0 : index
    %c0_10 = arith.constant 0 : index
    %12 = vector.load %arg7[%c0_9, %c0_10] : memref<2x1xf32, #tpu.memory_space<vmem>>, vector<2x1xf32>
    %cst_11 = arith.constant dense<0.000000e+00> : vector<2x2048xf32>
    %13 = tpu.matmul %11, %10, %cst_11 {dimension_numbers = #tpu.dot_dimension_numbers<[1], [0], [0], [1], [0, 0, 1, 1], [], []>} : vector<2x32xbf16>, vector<32x2048xbf16>, vector<2x2048xf32> -> vector<2x2048xf32>
    %14 = vector.broadcast %12 : vector<2x1xf32> to vector<2x2048xf32>
    %15 = arith.addf %13, %14 : vector<2x2048xf32>
    %16 = arith.truncf %15 : vector<2x2048xf32> to vector<2x2048xbf16>
    %c0_12 = arith.constant 0 : index
    %c0_13 = arith.constant 0 : index
    %c0_14 = arith.constant 0 : index
    %17 = vector.load %arg8[%c0_12, %c0_13, %c0_14] : memref<1x2x2048xbf16, #tpu.memory_space<vmem>>, vector<1x2x2048xbf16>
    %18 = vector.shape_cast %17 : vector<1x2x2048xbf16> to vector<2x2048xbf16>
    %19 = vector.shape_cast %16 : vector<2x2048xbf16> to vector<1x2x2048xbf16>
    tpu.vector_store %arg8[%c0_12, %c0_13, %c0_14], %19 {strides = array<i32>} : memref<1x2x2048xbf16, #tpu.memory_space<vmem>>, vector<1x2x2048xbf16>,
    %20 = vector.extract_strided_slice %15 {offsets = [1, 0], sizes = [1, 2048], strides = [1, 1]} : vector<2x2048xf32> to vector<1x2048xf32>
    %21 = vector.extract_strided_slice %15 {offsets = [0, 0], sizes = [1, 2048], strides = [1, 1]} : vector<2x2048xf32> to vector<1x2048xf32>
    %22 = arith.subf %20, %21 : vector<1x2048xf32>
    %cst_15 = arith.constant 0.000000e+00 : f32
    %23 = vector.broadcast %cst_15 : f32 to vector<1x2048xf32>
    %24 = arith.subf %23, %22 : vector<1x2048xf32>
    %25 = math.exp %24 : vector<1x2048xf32>
    %cst_16 = arith.constant 1.000000e+00 : f32
    %26 = vector.broadcast %cst_16 : f32 to vector<1x2048xf32>
    %27 = arith.addf %26, %25 : vector<1x2048xf32>
    %28 = tpu.reciprocal %27 {approx = true} : vector<1x2048xf32> -> vector<1x2048xf32>
    %c0_17 = arith.constant 0 : index
    %c0_18 = arith.constant 0 : index
    %c0_19 = arith.constant 0 : index
    %29 = vector.load %arg3[%c0_17, %c0_18, %c0_19] : memref<1x1x2048xi32, #tpu.memory_space<vmem>>, vector<1x1x2048xi32>
    %30 = vector.shape_cast %29 : vector<1x1x2048xi32> to vector<1x2048xi32>
    %c0_i32 = arith.constant 0 : i32
    %31 = vector.broadcast %c0_i32 : i32 to vector<1x2048xi32>
    %32 = arith.cmpi sgt, %30, %31 : vector<1x2048xi32>
    %33 = arith.extui %32 : vector<1x2048xi1> to vector<1x2048xi32>
    %34 = arith.sitofp %33 : vector<1x2048xi32> to vector<1x2048xf32>
    %c2048_i32 = arith.constant 2048 : i32
    %35 = arith.muli %arg1, %c2048_i32 : i32
    %36 = tpu.iota {dimensions = array<i32: 1>} : vector<1x2048xi32>
    %37 = vector.broadcast %35 : i32 to vector<1x2048xi32>
    %38 = arith.addi %37, %36 : vector<1x2048xi32>
    %c2048_i32_20 = arith.constant 2048 : i32
    %39 = vector.broadcast %c2048_i32_20 : i32 to vector<1x2048xi32>
    %40 = arith.cmpi slt, %38, %39 : vector<1x2048xi32>
    %41 = arith.extui %40 : vector<1x2048xi1> to vector<1x2048xi32>
    %42 = arith.sitofp %41 : vector<1x2048xi32> to vector<1x2048xf32>
    %43 = arith.mulf %28, %42 : vector<1x2048xf32>
    %44 = arith.mulf %34, %42 : vector<1x2048xf32>
    %45 = arith.mulf %43, %44 : vector<1x2048xf32>
    %cst_21 = arith.constant dense<0.000000e+00> : vector<1xf32>
    %46 = vector.multi_reduction <add>, %45, %cst_21 [1] : vector<1x2048xf32> to vector<1xf32>
    %47 = vector.shape_cast %46 : vector<1xf32> to vector<1x1xf32>
    %cst_22 = arith.constant dense<0.000000e+00> : vector<1xf32>
    %48 = vector.multi_reduction <add>, %43, %cst_22 [1] : vector<1x2048xf32> to vector<1xf32>
    %49 = vector.shape_cast %48 : vector<1xf32> to vector<1x1xf32>
    %cst_23 = arith.constant dense<0.000000e+00> : vector<1xf32>
    %50 = vector.multi_reduction <add>, %44, %cst_23 [1] : vector<1x2048xf32> to vector<1xf32>
    %51 = vector.shape_cast %50 : vector<1xf32> to vector<1x1xf32>
    %52 = tpu.iota {dimensions = array<i32: 1>} : vector<1x128xi32>
    %c0_i32_24 = arith.constant 0 : i32
    %53 = vector.broadcast %c0_i32_24 : i32 to vector<1x128xi32>
    %54 = arith.cmpi eq, %52, %53 : vector<1x128xi32>
    %cst_25 = arith.constant 0.000000e+00 : f32
    %55 = vector.shape_cast %47 : vector<1x1xf32> to vector<1x1xf32>
    %56 = vector.broadcast %55 : vector<1x1xf32> to vector<1x128xf32>
    %57 = vector.broadcast %cst_25 : f32 to vector<1x128xf32>
    %58 = arith.select %54, %56, %57 : vector<1x128xi1>, vector<1x128xf32>
    %c0_26 = arith.constant 0 : index
    %c0_27 = arith.constant 0 : index
    %c0_28 = arith.constant 0 : index
    %59 = vector.load %arg9[%c0_26, %c0_27, %c0_28] : memref<1x3x128xf32, #tpu.memory_space<vmem>>, vector<1x1x128xf32>
    %60 = vector.shape_cast %59 : vector<1x1x128xf32> to vector<1x128xf32>
    %61 = vector.shape_cast %58 : vector<1x128xf32> to vector<1x1x128xf32>
    tpu.vector_store %arg9[%c0_26, %c0_27, %c0_28], %61 {strides = array<i32>} : memref<1x3x128xf32, #tpu.memory_space<vmem>>, vector<1x1x128xf32>,
    %c0_i32_29 = arith.constant 0 : i32
    %62 = vector.broadcast %c0_i32_29 : i32 to vector<1x128xi32>
    %63 = arith.cmpi eq, %52, %62 : vector<1x128xi32>
    %cst_30 = arith.constant 0.000000e+00 : f32
    %64 = vector.shape_cast %49 : vector<1x1xf32> to vector<1x1xf32>
    %65 = vector.broadcast %64 : vector<1x1xf32> to vector<1x128xf32>
    %66 = vector.broadcast %cst_30 : f32 to vector<1x128xf32>
    %67 = arith.select %63, %65, %66 : vector<1x128xi1>, vector<1x128xf32>
    %c0_31 = arith.constant 0 : index
    %c1 = arith.constant 1 : index
    %c0_32 = arith.constant 0 : index
    %68 = vector.load %arg9[%c0_31, %c1, %c0_32] : memref<1x3x128xf32, #tpu.memory_space<vmem>>, vector<1x1x128xf32>
    %69 = vector.shape_cast %68 : vector<1x1x128xf32> to vector<1x128xf32>
    %70 = vector.shape_cast %67 : vector<1x128xf32> to vector<1x1x128xf32>
    tpu.vector_store %arg9[%c0_31, %c1, %c0_32], %70 {strides = array<i32>} : memref<1x3x128xf32, #tpu.memory_space<vmem>>, vector<1x1x128xf32>,
    %c0_i32_33 = arith.constant 0 : i32
    %71 = vector.broadcast %c0_i32_33 : i32 to vector<1x128xi32>
    %72 = arith.cmpi eq, %52, %71 : vector<1x128xi32>
    %cst_34 = arith.constant 0.000000e+00 : f32
    %73 = vector.shape_cast %51 : vector<1x1xf32> to vector<1x1xf32>
    %74 = vector.broadcast %73 : vector<1x1xf32> to vector<1x128xf32>
    %75 = vector.broadcast %cst_34 : f32 to vector<1x128xf32>
    %76 = arith.select %72, %74, %75 : vector<1x128xi1>, vector<1x128xf32>
    %c0_35 = arith.constant 0 : index
    %c2 = arith.constant 2 : index
    %c0_36 = arith.constant 0 : index
    %77 = vector.load %arg9[%c0_35, %c2, %c0_36] : memref<1x3x128xf32, #tpu.memory_space<vmem>>, vector<1x1x128xf32>
    %78 = vector.shape_cast %77 : vector<1x1x128xf32> to vector<1x128xf32>
    %79 = vector.shape_cast %76 : vector<1x128xf32> to vector<1x1x128xf32>
    tpu.vector_store %arg9[%c0_35, %c2, %c0_36], %79 {strides = array<i32>} : memref<1x3x128xf32, #tpu.memory_space<vmem>>, vector<1x1x128xf32>,
    return
  }
  func.func @transform_0(%arg0: i32, %arg1: i32) -> (i32, i32, i32) {
    %c0_i32 = arith.constant 0 : i32
    %c0_i32_0 = arith.constant 0 : i32
    return %arg0, %c0_i32, %arg1 : i32, i32, i32
  }
  func.func @transform_1(%arg0: i32, %arg1: i32) -> (i32, i32, i32) {
    %c0_i32 = arith.constant 0 : i32
    %c0_i32_0 = arith.constant 0 : i32
    return %arg0, %c0_i32, %arg1 : i32, i32, i32
  }
  func.func @transform_2(%arg0: i32, %arg1: i32) -> (i32, i32) {
    %c0_i32 = arith.constant 0 : i32
    %c0_i32_0 = arith.constant 0 : i32
    %c0_i32_1 = arith.constant 0 : i32
    return %c0_i32, %c0_i32_0 : i32, i32
  }
  func.func @transform_3(%arg0: i32, %arg1: i32) -> (i32, i32) {
    %c0_i32 = arith.constant 0 : i32
    %c0_i32_0 = arith.constant 0 : i32
    %c0_i32_1 = arith.constant 0 : i32
    return %c0_i32, %c0_i32_0 : i32, i32
  }
  func.func @transform_4(%arg0: i32, %arg1: i32) -> (i32, i32) {
    %c0_i32 = arith.constant 0 : i32
    %c0_i32_0 = arith.constant 0 : i32
    %c0_i32_1 = arith.constant 0 : i32
    return %c0_i32, %c0_i32_0 : i32, i32
  }
  func.func @transform_5(%arg0: i32, %arg1: i32) -> (i32, i32) {
    %c0_i32 = arith.constant 0 : i32
    %c0_i32_0 = arith.constant 0 : i32
    %c0_i32_1 = arith.constant 0 : i32
    return %c0_i32, %c0_i32_0 : i32, i32
  }
  func.func @transform_6(%arg0: i32, %arg1: i32) -> (i32, i32, i32) {
    %c0_i32 = arith.constant 0 : i32
    %c0_i32_0 = arith.constant 0 : i32
    return %arg0, %c0_i32, %arg1 : i32, i32, i32
  }
  func.func @transform_7(%arg0: i32, %arg1: i32) -> (i32, i32, i32) {
    %c0_i32 = arith.constant 0 : i32
    %c0_i32_0 = arith.constant 0 : i32
    return %arg0, %c0_i32, %arg1 : i32, i32, i32
  }
}

</mosaic_0001>

<bundles_post_ra>
// kernel: tpu_custom_call.1
= control target key start
LH: loop header
LB: loop body
LE: loop exit
PB: predicated region body
PF: predicated region fallthrough
CT: control target
= control target key end

     0   :  { %13 = vsyncpa [#allocation3], 0  ;;  %s3179_s0 = inlined_call_operand.hbm [shape: f32[2,4,2048], index: 0, kind: input, shape index: {}]   ;;  %s3180_s1 = inlined_call_operand.vmem [shape: s32[2,1,2048], index: 1, kind: input, shape index: {}]   ;;  %s3181_s2 = inlined_call_operand.vmem [shape: bf16[32,4], index: 2, kind: input, shape index: {}]   ;;  %s3182_s3 = inlined_call_operand.vmem [shape: f32[32,1], index: 3, kind: input, shape index: {}]   ;;  %s3183_s4 = inlined_call_operand.vmem [shape: bf16[2,32], index: 4, kind: input, shape index: {}]   ;;  %s3184_s5 = inlined_call_operand.vmem [shape: f32[2,1], index: 5, kind: input, shape index: {}]   ;;  %s3185_s6 = inlined_call_operand.hbm [shape: bf16[2,2,2048], index: 6, kind: output, shape index: {0}]   ;;  %s3186_s7 = inlined_call_operand.vmem [shape: f32[2,3,128], index: 7, kind: output, shape index: {1}]  }
   0x1   :  { %15 = vsyncpa [#allocation3 + $0x1], 0 }
   0x2   :  { %16 = vsyncpa [#allocation4], 0 }
   0x3   :  { %18 = vsyncpa [#allocation4 + $0x1], 0  ;;  %s2600_s24 = smov 0   ;;  %s2602_s25 = smov 0  }
   0x4   :  { %s2604_s26 = smov 0   ;;  %s2606_s27 = smov 0  }
   0x5   :  { %s2608_s28 = smov 0   ;;  %s2610_s29 = smov 0  }
   0x6 LB: > { %s2235_s30 = sadd.s32 4294967295, %s2552_s29   ;;  %s2236_s8 = sadd.s32 4294967294, %s2552_s29   ;;  %s2552_s29 = sphi %s2610_s29, %s24_s29   ;;  %s2548_s28 = sphi %s2608_s28, %s3202_s28   ;;  %s2544_s27 = sphi %s2606_s27, %s3201_s27   ;;  %s2540_s26 = sphi %s2604_s26, %s3200_s26   ;;  %s2536_s25 = sphi %s2602_s25, %s3199_s25   ;;  %s2532_s24 = sphi %s2600_s24, %s3198_s24  }
   0x7   : > { %s36_s9 = sadd.s32 1, %s2548_s28  ;;  %s45_s10 = sadd.s32 1, %s2540_s26 }
   0x8   : > { %p38_p0 = scmp.ge.s32.totalorder %s36_s9, 2  ;;  %p52_p1 = scmp.ne.s32.totalorder %s2540_s26, %s2536_s25 }
   0x9   : > { %p53_p2 = scmp.eq.s32.totalorder %s2552_s29, 0  ;;  %p58_p3 = scmp.ne.s32.totalorder %s2536_s25, %s2532_s24 }
   0xa   : > { %s3204_s9 = smov (%p38_p0, %s36_s9), 0  ;;  %p59_p5 = scmp.eq.s32.totalorder %s2235_s30, 0 }
   0xb   : > { %p2641_p4 = por %p53_p2, %p52_p1  ;;  %s40_s12 = ssub.s32 %s2548_s28, %s3204_s9 }
   0xc   : > { %p196_p6 = scmp.eq.s32.totalorder %s2235_s30, 1  ;;  %p43_p7 = scmp.eq.s32.totalorder %s40_s12, 0 }
   0xd   : > { %p2647_p8 = por %p59_p5, %p58_p3  ;;  %p202_p10 = scmp.eq.s32.totalorder %s2236_s8, 1 }
   0xe   : > { %p2651_p9 = por %p196_p6, %p52_p1  ;;  %p2310_p13 = scmp.lt.s32.totalorder %s2552_s29, 2 }
   0xf   : > { %s2656_s15 = scalar_select %p43_p7, %s2540_s26, %s45_s10  }
  0x10   : > { %s3190_s14 = scalar_select %p2651_p9, 1, 0 }
  0x11   : > { %p2658_p11 = por %p202_p10, %p58_p3  ;;  %s262_s17 = sand.u32 1, %s2540_s26  }
  0x12   : > { %s2239_s18 = sshll.u32 %s262_s17, 6  ;;  %s2296_s19 = sshll.u32 %s2548_s28, 10 }
  0x13   : > { %s3191_s16 = scalar_select %p2658_p11, 1, 0 }
  0x14   : > { %s2669_s22 = scalar_lea.hbm %s3179_s0, %s2296_s19  ;;  %s266_s23 = scalar_lea.vmem [#allocation2], %s2239_s18 }
  0x15   : > { %s276_s30 = sshll.u32 %s266_s23, 4  ;;  %p2675_p0 = pnand %p2310_p13, %p2641_p4  ;;  %s2671_s30 = int_to_ptr.vmem [resolvable:$true] %s276_s30 }
  0x16   : > { %s263_s10 = scalar_lea.sflag [#allocation3], %s262_s17  ;;  %s2440_s12 = scalar_lea.hbm %s2669_s22, 1024 }
  0x17   : > { %p2441_p3 = scmp.ne.s32.totalorder %s2669_s22, %s2440_s12  ;;  %p2442_p5 = pneg %p2675_p0 }
  0x18   : > { %s2445_s11 = scalar_lea.hbm %s3179_s0, 2048  ;;  %p2446_p4 = scmp.lt.u32.totalorder %s2669_s22, %s3179_s0 }
  0x19   : > { %p2443_p6 = pnand %p2442_p5, %p2441_p3  ;;  %p2447_p10 = scmp.lt.u32.totalorder %s2445_s11, %s2440_s12 }
  0x1a   : > { %p2449_p12 = scmp.lt.u32.totalorder %s2440_s12, %s2669_s22 }
  0x1b   : > { %p2444_p7 = pneg %p2443_p6  ;;  %p2448_p13 = por %p2447_p10, %p2446_p4 }
  0x1d   : > { %p2450_p1 = por %p2449_p12, %p2448_p13 }
  0x1f   : > { %p2451_p2 = pnand %p2450_p1, %p2444_p7 }
  0x21   : > { %2454 = shalt.err (!%p2451_p2)
}
  0x22   : > { %s2455_s17 = scalar_lea.vmem %s2671_s30, 1024  ;;  %s2554_s23 = smov [#allocation2]  }
  0x23   : > { %p2456_p3 = scmp.ne.s32.totalorder %s2671_s30, %s2455_s17  ;;  %s2460_s18 = sshll.u32 %s2554_s23, 4  ;;  %s2461_s18 = int_to_ptr.vmem [resolvable:$false] %s2460_s18 }
  0x24   : > { %s2462_s19 = scalar_lea.vmem %s2461_s18, 2048  ;;  %p2463_p9 = scmp.lt.s32.totalorder %s2671_s30, %s2461_s18 }
  0x25   : > { %p2458_p6 = pnand %p2456_p3, %p2442_p5  ;;  %p2464_p4 = scmp.lt.s32.totalorder %s2462_s19, %s2455_s17 }
  0x27   : > { %p2459_p11 = pneg %p2458_p6  ;;  %p2465_p10 = por %p2464_p4, %p2463_p9 }
  0x29   : > { %p2466_p12 = pnand %p2465_p10, %p2459_p11 }
  0x2b   : > { %2469 = shalt.err (!%p2466_p12)
}
  0x2c   : > { %2305 = dma.hbm_to_vmem [thread:$0]  (!%p2675_p0), %s2669_s22, 1024, %s2671_s30, %s263_s10  }
  0x2d   : > { %p3193_p1 = scmp.lt.s32.totalorder %s2552_s29, 3  ;;  %p3194_p2 = scmp.ge.s32.totalorder %s2552_s29, 1 }
  0x2f   : > { %p294_p5 = pnand %p3194_p2, %p3193_p1 }
  0x30   : > { %s2711_s12 = sand.u32 (!%p294_p5), 1, %s2536_s25  }
  0x31   : > { %297 = sbr.rel (%p294_p5) target bundleno = 754 (0x2f2), region = 44  ;;  %s2243_s11 = sshll.u32 (!%p294_p5), %s2711_s12, 6 }
  0x32   : > { %s300_s20 = scalar_lea.sflag (!%p294_p5), [#allocation3], %s2711_s12  ;;  %s2715_s21 = scalar_lea.vmem (!%p294_p5), [#allocation2], %s2243_s11 }
  0x38   : > { %2523 = dma.done.wait (%p2647_p8), %s300_s20, 1024  }
  0x39   : > { %2525 = vsyncadd (%p2647_p8), %s300_s20, 4294966272  ;;  %v2555_v0 = vmov 0   ;;  %v368_v1 = vld [vmem:[%s2715_s21] sm:$0xff]  ;;  %vm461_vm0 = vcmask 1041408   ;;  %v369_v2 = vld [vmem:[%s2715_s21 + $0x8] sm:$0xff]  ;;  %vm454_vm1 = vcmask 31744  }
  0x3a   : > { %542 = vmatprep.mubr.bf16.mxu0 %v2555_v0  ;;  %595 = vmatprep.mubr.bf16.mxu1 %v2555_v0  ;;  %v392_v3 = vcombine.high %v368_v1, %v368_v1  ;;  %v393_v4 = vcombine.high %v369_v2, %v369_v2  ;;  %v408_v5 = vpack.c.bf16 %v368_v1, %v368_v1  ;;  %v370_v7 = vld [vmem:[%s2715_s21 + $0x10] sm:$0xff]  ;;  %v371_v10 = vld [vmem:[%s2715_s21 + $0x18] sm:$0xff]  ;;  %v372_v15 = vld [vmem:[%s2715_s21 + $0x20] sm:$0xff]  ;;  %vm1037_vm2 = vcmask 261120   ;;  %p351_p8 = scmp.lt.s32.totalorder %s2544_s27, 1  ;;  %s2244_s11 = sshll.u32 %s2711_s12, 4 }
  0x3b   : > { %2364 = vset.pattern.permute.xlu0 %v2555_v0  ;;  %2365 = vset.pattern.permute.xlu1 %v2555_v0  ;;  %v410_v6 = vpack.c.bf16 %v369_v2, %v369_v2  ;;  %v394_v8 = vcombine.high %v370_v7, %v370_v7  ;;  %v412_v9 = vpack.c.bf16 %v370_v7, %v370_v7  ;;  %v373_v16 = vld [vmem:[%s2715_s21 + $0x28] sm:$0xff]  ;;  %v380_v20 = vld [vmem:[%s3182_s3] sm:$0xff]  ;;  %v382_v24 = vld [vmem:[%s3182_s3 + $0x10] sm:$0xff]  ;;  %vm2037_vm4 = vcmask 1040384   ;;  %s3001_s20 = scalar_lea.vmem [#allocation5], %s2244_s11  ;;  %s2297_s13 = sshll.u32 %s2544_s27, 8 }
  0x3c   : > { %v409_v11 = vpack.c.bf16 %v392_v3, %v392_v3  ;;  %v411_v12 = vpack.c.bf16 %v393_v4, %v393_v4  ;;  %v463_v13 = vsel %vm461_vm0, %v408_v5, 0  ;;  %v395_v18 = vcombine.high %v371_v10, %v371_v10  ;;  %v2741_v21 = vld [vmem:[%s3181_s2] sm:$0xff]   ;;  %426 = vperm.xlu0 %2364, %v380_v20   ;;  %436 = vperm.xlu1 %2365, %v382_v24   ;;  %v381_v30 = vld [vmem:[%s3182_s3 + $0x8] sm:$0xff]  ;;  %v383_v31 = vld [vmem:[%s3182_s3 + $0x18] sm:$0xff]  ;;  %s2916_s10 = scalar_select %p351_p8, %s2544_s27, 1 }
  0x3d   : > { %v469_v14 = vsel %vm461_vm0, %v410_v6, 0  ;;  %v413_v17 = vpack.c.bf16 %v394_v8, %v394_v8  ;;  %v414_v19 = vpack.c.bf16 %v371_v10, %v371_v10  ;;  %v396_v22 = vcombine.high %v372_v15, %v372_v15  ;;  %v2371_v32 = vld [vmem:[%s3181_s2 + $0x8] sm:$0xff]   ;;  %v1031_v33 = vld [vmem:[%s3184_s5] sm:$0x3]  ;;  %v374_v34 = vld [vmem:[%s2715_s21 + $0x30] sm:$0xff]  ;;  %s2102_s8 = sshll.u32 %s3001_s20, 4  ;;  %s2103_s8 = int_to_ptr.vmem [resolvable:$true] %s2102_s8 }
  0x3e   : > { %2249 = vmatprep.subr.msk.bf16.mxu0 %vm461_vm0, %v409_v11  ;;  %2252 = vmatprep.subr.msk.bf16.mxu1 %vm461_vm0, %v411_v12  ;;  %v397_v23 = vcombine.high %v373_v16, %v373_v16  ;;  %v415_v25 = vpack.c.bf16 %v395_v18, %v395_v18  ;;  %v475_v26 = vsel %vm461_vm0, %v412_v9, 0  ;;  %v375_v35 = vld [vmem:[%s2715_s21 + $0x38] sm:$0xff]  ;;  %v416_v36 = vpack.c.bf16 %v372_v15, %v372_v15  ;;  %s2245_s17 = sshll.u32 %s2916_s10, 4  ;;  %s3130_s21 = scalar_lea.hbm %s3185_s6, %s2297_s13 }
  0x3f   : > { %511 = vmatpush1.bf16.msra.mxu0 %v463_v13  ;;  %564 = vmatpush1.bf16.msra.mxu1 %v469_v14  ;;  %v481_v27 = vsel %vm461_vm0, %v414_v19, 0  ;;  %v417_v28 = vpack.c.bf16 %v396_v22, %v396_v22  ;;  %v418_v37 = vpack.c.bf16 %v373_v16, %v373_v16  ;;  %v398_v38 = vcombine.high %v374_v34, %v374_v34  ;;  %s2926_s19 = scalar_lea.vmem %s3180_s1, %s2245_s17  ;;  %s2079_s17 = scalar_lea.sflag [#allocation4], %s2711_s12 }
  0x40   : > { %2255 = vmatprep.subr.msk.bf16.mxu0 %vm461_vm0, %v413_v17  ;;  %2258 = vmatprep.subr.msk.bf16.mxu1 %vm461_vm0, %v415_v25  ;;  %v419_v29 = vpack.c.bf16 %v397_v23, %v397_v23  ;;  %v399_v39 = vcombine.high %v375_v35, %v375_v35  ;;  %v487_v40 = vsel %vm461_vm0, %v416_v36, 0  ;;  %v420_v44 = vpack.c.bf16 %v374_v34, %v374_v34  ;;  %s2470_s23 = scalar_lea.vmem %s2103_s8, 256  ;;  %p3195_p11 = scmp.ne.s32.totalorder %s3190_s14, 0 }
  0x41   : > { %431 = vperm.xlu0 %2364, %v381_v30   ;;  %441 = vperm.xlu1 %2365, %v383_v31   ;;  %v493_v41 = vsel %vm461_vm0, %v418_v37, 0  ;;  %v421_v42 = vpack.c.bf16 %v398_v38, %v398_v38  ;;  %v422_v45 = vpack.c.bf16 %v375_v35, %v375_v35  ;;  %vm1970_vm6 = vcmask 1041409   ;;  %p2471_p9 = scmp.ne.s32.totalorder %s2103_s8, %s2470_s23  ;;  %s2559_s18 = smov [#allocation5]  }
  0x42   : > { %2250 = vmatmul.mubr.msk.bf16.vlgmr.msra.gmra.mrb[0].mxu0 %vm454_vm1, %v2741_v21  ;;  %2253 = vmatmul.mubr.msk.bf16.vlgmr.msra.gmra.mrb[0].mxu1 %vm454_vm1, %v2741_v21  ;;  %v423_v43 = vpack.c.bf16 %v399_v39, %v399_v39  ;;  %v499_v46 = vsel %vm461_vm0, %v420_v44, 0 }
  0x43   : > { %617 = vmatpush1.bf16.msra.mxu0 %v475_v26  ;;  %670 = vmatpush1.bf16.msra.mxu1 %v481_v27  ;;  %v505_v47 = vsel %vm461_vm0, %v422_v45, 0  ;;  %p2472_p0 = pnand %p2471_p9, %p3195_p11 }
  0x44   : > { %552 = vmatprep.mubr.bf16.mxu0 %v2555_v0  ;;  %605 = vmatprep.mubr.bf16.mxu1 %v2555_v0 }
  0x45   : > { %2261 = vmatprep.subr.msk.bf16.mxu0 %vm461_vm0, %v417_v28  ;;  %2264 = vmatprep.subr.msk.bf16.mxu1 %vm461_vm0, %v419_v29  ;;  %p2473_p7 = pneg %p2472_p0 }
  0x46   : > { %1034 = vperm.xlu0 %2364, %v1031_v33  }
  0x4a   : > { %2251 = vmatmul.mubr.msk.bf16.gmra.mrb[4].mxu0 %vm454_vm1, %v2371_v32  ;;  %2254 = vmatmul.mubr.msk.bf16.gmra.mrb[4].mxu1 %vm454_vm1, %v2371_v32 }
  0x4b   : > { %648 = vmatprep.mubr.bf16.mxu0 %v2555_v0  ;;  %701 = vmatprep.mubr.bf16.mxu1 %v2555_v0 }
  0x52   : > { %2256 = vmatmul.mubr.msk.bf16.vlgmr.msra.gmra.mrb[8].mxu0 %vm454_vm1, %v2741_v21  ;;  %2259 = vmatmul.mubr.msk.bf16.vlgmr.msra.gmra.mrb[8].mxu1 %vm454_vm1, %v2741_v21 }
  0x53   : > { %723 = vmatpush1.bf16.msra.mxu0 %v487_v40  ;;  %776 = vmatpush1.bf16.msra.mxu1 %v493_v41 }
  0x54   : > { %658 = vmatprep.mubr.bf16.mxu0 %v2555_v0  ;;  %711 = vmatprep.mubr.bf16.mxu1 %v2555_v0 }
  0x55   : > { %2267 = vmatprep.subr.msk.bf16.mxu0 %vm461_vm0, %v421_v42  ;;  %2270 = vmatprep.subr.msk.bf16.mxu1 %vm461_vm0, %v423_v43 }
  0x5a   : > { %2257 = vmatmul.mubr.msk.bf16.gmra.mrb[12].mxu0 %vm454_vm1, %v2371_v32  ;;  %2260 = vmatmul.mubr.msk.bf16.gmra.mrb[12].mxu1 %vm454_vm1, %v2371_v32 }
  0x5b   : > { %754 = vmatprep.mubr.bf16.mxu0 %v2555_v0  ;;  %807 = vmatprep.mubr.bf16.mxu1 %v2555_v0 }
  0x62   : > { %2262 = vmatmul.mubr.msk.bf16.vlgmr.msra.gmra.mrb[16].mxu0 %vm454_vm1, %v2741_v21  ;;  %2265 = vmatmul.mubr.msk.bf16.vlgmr.msra.gmra.mrb[16].mxu1 %vm454_vm1, %v2741_v21 }
  0x63   : > { %829 = vmatpush1.bf16.msra.mxu0 %v499_v46  ;;  %882 = vmatpush1.bf16.msra.mxu1 %v505_v47 }
  0x64   : > { %764 = vmatprep.mubr.bf16.mxu0 %v2555_v0  ;;  %817 = vmatprep.mubr.bf16.mxu1 %v2555_v0 }
  0x6a   : > { %2263 = vmatmul.mubr.msk.bf16.gmra.mrb[20].mxu0 %vm454_vm1, %v2371_v32  ;;  %2266 = vmatmul.mubr.msk.bf16.gmra.mrb[20].mxu1 %vm454_vm1, %v2371_v32 }
  0x6b   : > { %860 = vmatprep.mubr.bf16.mxu0 %v2555_v0  ;;  %913 = vmatprep.mubr.bf16.mxu1 %v2555_v0 }
  0x72   : > { %2268 = vmatmul.mubr.msk.bf16.vlgmr.msra.gmra.mrb[24].mxu0 %vm454_vm1, %v2741_v21  ;;  %2271 = vmatmul.mubr.msk.bf16.vlgmr.msra.gmra.mrb[24].mxu1 %vm454_vm1, %v2741_v21 }
  0x73   : > { %870 = vmatprep.mubr.bf16.mxu0 %v2555_v0  ;;  %923 = vmatprep.mubr.bf16.mxu1 %v2555_v0 }
  0x7a   : > { %2269 = vmatmul.mubr.msk.bf16.gmra.mrb[28].mxu0 %vm454_vm1, %v2371_v32  ;;  %2272 = vmatmul.mubr.msk.bf16.gmra.mrb[28].mxu1 %vm454_vm1, %v2371_v32 }
  0x7b   : > { %1073 = vmatprep.mubr.bf16.mxu0 %v2555_v0  ;;  %1114 = vmatprep.mubr.bf16.mxu1 %v2555_v0 }
  0xbb   : > { %v2812_v48 = vpop.permute.xlu0 %426  ;;  %v2816_v50 = vpop.permute.xlu1 %436 }
  0xc0   : > { %v2814_v49 = vpop.permute.xlu0 %431  ;;  %v2826_v14 = vpop.permute.xlu1 %441 }
 0x115   : > { %v544_v51 = vpop.f32.mrb[0].mxu0  ;;  %v597_v52 = vpop.f32.mrb[0].mxu1 }
 0x116   : > { %v545_v53 = vadd.f32 %v544_v51, %v2812_v48  ;;  %v598_v54 = vadd.f32 %v597_v52, %v2812_v48  ;;  %v546_v55 = vpop.f32.mrb[1].mxu0  ;;  %v599_v56 = vpop.f32.mrb[1].mxu1 }
 0x117   : > { %v547_v57 = vadd.f32 %v546_v55, %v2812_v48  ;;  %v600_v58 = vadd.f32 %v599_v56, %v2812_v48  ;;  %v548_v59 = vpop.f32.mrb[2].mxu0  ;;  %v601_v60 = vpop.f32.mrb[2].mxu1 }
 0x118   : > { %v936_v61 = vmax.f32 %v598_v54, 0.0  ;;  %v549_v62 = vadd.f32 %v548_v59, %v2814_v49  ;;  %v602_v63 = vadd.f32 %v601_v60, %v2814_v49  ;;  %v550_v1 = vpop.f32.mrb[3].mxu0  ;;  %v603_v2 = vpop.f32.mrb[3].mxu1  ;;  %v934_v6 = vmax.f32 %v545_v53, 0.0 }
 0x119   : > { %v937_v3 = vmax.f32 %v600_v58, 0.0  ;;  %v551_v4 = vadd.f32 %v550_v1, %v2814_v49  ;;  %v604_v5 = vadd.f32 %v603_v2, %v2814_v49  ;;  %v935_v9 = vmax.f32 %v547_v57, 0.0 }
 0x11a   : > { %v950_v7 = vmax.f32 %v549_v62, 0.0  ;;  %v952_v8 = vmax.f32 %v602_v63, 0.0  ;;  %v2845_v63 = vld [vmem:[%s3183_s4] sm:$0x1] }
 0x11b   : > { %v951_v10 = vmax.f32 %v551_v4, 0.0  ;;  %v953_v11 = vmax.f32 %v604_v5, 0.0 }
 0x11c   : > { %v998_v12 = vpack.c.bf16 %v950_v7, %v934_v6  ;;  %v1000_v13 = vpack.c.bf16 %v952_v8, %v936_v61 }
 0x11d   : > { %v999_v15 = vpack.c.bf16 %v951_v10, %v935_v9  ;;  %v1001_v16 = vpack.c.bf16 %v953_v11, %v937_v3  ;;  %v554_v17 = vpop.f32.mrb[4].mxu0  ;;  %v607_v18 = vpop.f32.mrb[4].mxu1 }
 0x11e   : > { %v555_v19 = vadd.f32 %v554_v17, %v2816_v50  ;;  %v608_v20 = vadd.f32 %v607_v18, %v2816_v50  ;;  %v556_v21 = vpop.f32.mrb[5].mxu0  ;;  %v609_v22 = vpop.f32.mrb[5].mxu1 }
 0x11f   : > { %v557_v23 = vadd.f32 %v556_v21, %v2816_v50  ;;  %v610_v24 = vadd.f32 %v609_v22, %v2816_v50  ;;  %v558_v25 = vpop.f32.mrb[6].mxu0  ;;  %v611_v26 = vpop.f32.mrb[6].mxu1  ;;  %1041 = vmatprep.subr.bf16.mxu0 %v999_v15  ;;  %1082 = vmatprep.subr.bf16.mxu1 %v1001_v16 }
 0x120   : > { %v968_v27 = vmax.f32 %v608_v20, 0.0  ;;  %v559_v28 = vadd.f32 %v558_v25, %v2826_v14  ;;  %v612_v29 = vadd.f32 %v611_v26, %v2826_v14  ;;  %v560_v30 = vpop.f32.mrb[7].mxu0  ;;  %v613_v31 = vpop.f32.mrb[7].mxu1  ;;  %1042 = vmatpush1.bf16.msra.mxu0 %v998_v12  ;;  %1083 = vmatpush1.bf16.msra.mxu1 %v1000_v13  ;;  %v966_v35 = vmax.f32 %v555_v19, 0.0 }
 0x121   : > { %v969_v32 = vmax.f32 %v610_v24, 0.0  ;;  %v561_v33 = vadd.f32 %v560_v30, %v2826_v14  ;;  %v614_v34 = vadd.f32 %v613_v31, %v2826_v14  ;;  %v967_v38 = vmax.f32 %v557_v23, 0.0 }
 0x122   : > { %v982_v36 = vmax.f32 %v559_v28, 0.0  ;;  %v984_v37 = vmax.f32 %v612_v29, 0.0 }
 0x123   : > { %v983_v39 = vmax.f32 %v561_v33, 0.0  ;;  %v985_v40 = vmax.f32 %v614_v34, 0.0 }
 0x124   : > { %v1014_v41 = vpack.c.bf16 %v982_v36, %v966_v35  ;;  %v1016_v42 = vpack.c.bf16 %v984_v37, %v968_v27 }
 0x125   : > { %v1015_v43 = vpack.c.bf16 %v983_v39, %v967_v38  ;;  %v1017_v44 = vpack.c.bf16 %v985_v40, %v969_v32  ;;  %v650_v45 = vpop.f32.mrb[8].mxu0  ;;  %v703_v46 = vpop.f32.mrb[8].mxu1 }
 0x126   : > { %v651_v47 = vadd.f32 %v650_v45, %v2812_v48  ;;  %v704_v51 = vadd.f32 %v703_v46, %v2812_v48  ;;  %v652_v52 = vpop.f32.mrb[9].mxu0  ;;  %v705_v53 = vpop.f32.mrb[9].mxu1 }
 0x127   : > { %v653_v54 = vadd.f32 %v652_v52, %v2812_v48  ;;  %v706_v55 = vadd.f32 %v705_v53, %v2812_v48  ;;  %v654_v56 = vpop.f32.mrb[10].mxu0  ;;  %v707_v57 = vpop.f32.mrb[10].mxu1  ;;  %1043 = vmatprep.subr.bf16.mxu0 %v1015_v43  ;;  %1084 = vmatprep.subr.bf16.mxu1 %v1017_v44 }
 0x128   : > { %v940_v58 = vmax.f32 %v704_v51, 0.0  ;;  %v655_v59 = vadd.f32 %v654_v56, %v2814_v49  ;;  %v708_v60 = vadd.f32 %v707_v57, %v2814_v49  ;;  %v656_v61 = vpop.f32.mrb[11].mxu0  ;;  %v709_v62 = vpop.f32.mrb[11].mxu1  ;;  %1044 = vmatpush1.bf16.msra.mxu0 %v1014_v41  ;;  %1085 = vmatpush1.bf16.msra.mxu1 %v1016_v42  ;;  %v938_v4 = vmax.f32 %v651_v47, 0.0 }
 0x129   : > { %v941_v1 = vmax.f32 %v706_v55, 0.0  ;;  %v657_v2 = vadd.f32 %v656_v61, %v2814_v49  ;;  %v710_v3 = vadd.f32 %v709_v62, %v2814_v49  ;;  %v939_v7 = vmax.f32 %v653_v54, 0.0 }
 0x12a   : > { %v954_v5 = vmax.f32 %v655_v59, 0.0  ;;  %v956_v6 = vmax.f32 %v708_v60, 0.0 }
 0x12b   : > { %v955_v8 = vmax.f32 %v657_v2, 0.0  ;;  %v957_v9 = vmax.f32 %v710_v3, 0.0  ;;  %2273 = vmatmul.mubr.msk.bf16.vlgmr.msra.gmra.mrb[32].mxu0 %vm1037_vm2, %v2845_v63  ;;  %2274 = vmatmul.mubr.msk.bf16.vlgmr.msra.gmra.mrb[32].mxu1 %vm1037_vm2, %v2845_v63 }
 0x12c   : > { %v1002_v10 = vpack.c.bf16 %v954_v5, %v938_v4  ;;  %v1004_v11 = vpack.c.bf16 %v956_v6, %v940_v58  ;;  %1155 = vmatprep.mubr.bf16.mxu0 %v2555_v0  ;;  %1196 = vmatprep.mubr.bf16.mxu1 %v2555_v0 }
 0x12d   : > { %v1003_v12 = vpack.c.bf16 %v955_v8, %v939_v7  ;;  %v1005_v13 = vpack.c.bf16 %v957_v9, %v941_v1  ;;  %v660_v15 = vpop.f32.mrb[12].mxu0  ;;  %v713_v16 = vpop.f32.mrb[12].mxu1 }
 0x12e   : > { %v661_v17 = vadd.f32 %v660_v15, %v2816_v50  ;;  %v714_v18 = vadd.f32 %v713_v16, %v2816_v50  ;;  %v662_v19 = vpop.f32.mrb[13].mxu0  ;;  %v715_v20 = vpop.f32.mrb[13].mxu1 }
 0x12f   : > { %v663_v21 = vadd.f32 %v662_v19, %v2816_v50  ;;  %v716_v22 = vadd.f32 %v715_v20, %v2816_v50  ;;  %v664_v23 = vpop.f32.mrb[14].mxu0  ;;  %v717_v24 = vpop.f32.mrb[14].mxu1  ;;  %1123 = vmatprep.subr.bf16.mxu0 %v1003_v12  ;;  %1164 = vmatprep.subr.bf16.mxu1 %v1005_v13 }
 0x130   : > { %v972_v25 = vmax.f32 %v714_v18, 0.0  ;;  %v665_v26 = vadd.f32 %v664_v23, %v2826_v14  ;;  %v718_v27 = vadd.f32 %v717_v24, %v2826_v14  ;;  %v666_v28 = vpop.f32.mrb[15].mxu0  ;;  %v719_v29 = vpop.f32.mrb[15].mxu1  ;;  %1124 = vmatpush1.bf16.msra.mxu0 %v1002_v10  ;;  %1165 = vmatpush1.bf16.msra.mxu1 %v1004_v11  ;;  %v970_v33 = vmax.f32 %v661_v17, 0.0 }
 0x131   : > { %v973_v30 = vmax.f32 %v716_v22, 0.0  ;;  %v667_v31 = vadd.f32 %v666_v28, %v2826_v14  ;;  %v720_v32 = vadd.f32 %v719_v29, %v2826_v14  ;;  %v971_v36 = vmax.f32 %v663_v21, 0.0 }
 0x132   : > { %v986_v34 = vmax.f32 %v665_v26, 0.0  ;;  %v988_v35 = vmax.f32 %v718_v27, 0.0 }
 0x133   : > { %v987_v37 = vmax.f32 %v667_v31, 0.0  ;;  %v989_v38 = vmax.f32 %v720_v32, 0.0 }
 0x134   : > { %v1018_v39 = vpack.c.bf16 %v986_v34, %v970_v33  ;;  %v1020_v40 = vpack.c.bf16 %v988_v35, %v972_v25 }
 0x135   : > { %v1019_v41 = vpack.c.bf16 %v987_v37, %v971_v36  ;;  %v1021_v42 = vpack.c.bf16 %v989_v38, %v973_v30  ;;  %v756_v43 = vpop.f32.mrb[16].mxu0  ;;  %v809_v44 = vpop.f32.mrb[16].mxu1 }
 0x136   : > { %v757_v45 = vadd.f32 %v756_v43, %v2812_v48  ;;  %v810_v46 = vadd.f32 %v809_v44, %v2812_v48  ;;  %v758_v47 = vpop.f32.mrb[17].mxu0  ;;  %v811_v51 = vpop.f32.mrb[17].mxu1 }
 0x137   : > { %v759_v52 = vadd.f32 %v758_v47, %v2812_v48  ;;  %v812_v53 = vadd.f32 %v811_v51, %v2812_v48  ;;  %v760_v54 = vpop.f32.mrb[18].mxu0  ;;  %v813_v55 = vpop.f32.mrb[18].mxu1  ;;  %1125 = vmatprep.subr.bf16.mxu0 %v1019_v41  ;;  %1166 = vmatprep.subr.bf16.mxu1 %v1021_v42 }
 0x138   : > { %v761_v56 = vadd.f32 %v760_v54, %v2814_v49  ;;  %v814_v57 = vadd.f32 %v813_v55, %v2814_v49  ;;  %v762_v58 = vpop.f32.mrb[19].mxu0  ;;  %v815_v59 = vpop.f32.mrb[19].mxu1  ;;  %1126 = vmatpush1.bf16.msra.mxu0 %v1018_v39  ;;  %1167 = vmatpush1.bf16.msra.mxu1 %v1020_v40  ;;  %v942_v62 = vmax.f32 %v757_v45, 0.0  ;;  %v944_v1 = vmax.f32 %v810_v46, 0.0 }
 0x139   : > { %v763_v60 = vadd.f32 %v762_v58, %v2814_v49  ;;  %v816_v61 = vadd.f32 %v815_v59, %v2814_v49  ;;  %v943_v4 = vmax.f32 %v759_v52, 0.0  ;;  %v945_v5 = vmax.f32 %v812_v53, 0.0 }
 0x13a   : > { %v958_v2 = vmax.f32 %v761_v56, 0.0  ;;  %v960_v3 = vmax.f32 %v814_v57, 0.0 }
 0x13b   : > { %v959_v6 = vmax.f32 %v763_v60, 0.0  ;;  %v961_v7 = vmax.f32 %v816_v61, 0.0  ;;  %2275 = vmatmul.mubr.msk.bf16.vlgmr.msra.gmra.mrb[36].mxu0 %vm1037_vm2, %v2845_v63  ;;  %2276 = vmatmul.mubr.msk.bf16.vlgmr.msra.gmra.mrb[36].mxu1 %vm1037_vm2, %v2845_v63 }
 0x13c   : > { %v1006_v8 = vpack.c.bf16 %v958_v2, %v942_v62  ;;  %v1008_v9 = vpack.c.bf16 %v960_v3, %v944_v1  ;;  %1237 = vmatprep.mubr.bf16.mxu0 %v2555_v0  ;;  %1278 = vmatprep.mubr.bf16.mxu1 %v2555_v0 }
 0x13d   : > { %v1007_v10 = vpack.c.bf16 %v959_v6, %v943_v4  ;;  %v1009_v11 = vpack.c.bf16 %v961_v7, %v945_v5  ;;  %v766_v12 = vpop.f32.mrb[20].mxu0  ;;  %v819_v13 = vpop.f32.mrb[20].mxu1 }
 0x13e   : > { %v767_v15 = vadd.f32 %v766_v12, %v2816_v50  ;;  %v820_v16 = vadd.f32 %v819_v13, %v2816_v50  ;;  %v768_v17 = vpop.f32.mrb[21].mxu0  ;;  %v821_v18 = vpop.f32.mrb[21].mxu1 }
 0x13f   : > { %v769_v19 = vadd.f32 %v768_v17, %v2816_v50  ;;  %v822_v20 = vadd.f32 %v821_v18, %v2816_v50  ;;  %v770_v21 = vpop.f32.mrb[22].mxu0  ;;  %v823_v22 = vpop.f32.mrb[22].mxu1  ;;  %1205 = vmatprep.subr.bf16.mxu0 %v1007_v10  ;;  %1246 = vmatprep.subr.bf16.mxu1 %v1009_v11 }
 0x140   : > { %v771_v23 = vadd.f32 %v770_v21, %v2826_v14  ;;  %v824_v24 = vadd.f32 %v823_v22, %v2826_v14  ;;  %v772_v25 = vpop.f32.mrb[23].mxu0  ;;  %v825_v26 = vpop.f32.mrb[23].mxu1  ;;  %1206 = vmatpush1.bf16.msra.mxu0 %v1006_v8  ;;  %1247 = vmatpush1.bf16.msra.mxu1 %v1008_v9  ;;  %v974_v29 = vmax.f32 %v767_v15, 0.0  ;;  %v976_v30 = vmax.f32 %v820_v16, 0.0 }
 0x141   : > { %v773_v27 = vadd.f32 %v772_v25, %v2826_v14  ;;  %v826_v28 = vadd.f32 %v825_v26, %v2826_v14  ;;  %v975_v33 = vmax.f32 %v769_v19, 0.0  ;;  %v977_v34 = vmax.f32 %v822_v20, 0.0 }
 0x142   : > { %v990_v31 = vmax.f32 %v771_v23, 0.0  ;;  %v992_v32 = vmax.f32 %v824_v24, 0.0 }
 0x143   : > { %v991_v35 = vmax.f32 %v773_v27, 0.0  ;;  %v993_v36 = vmax.f32 %v826_v28, 0.0 }
 0x144   : > { %v1022_v37 = vpack.c.bf16 %v990_v31, %v974_v29  ;;  %v1024_v38 = vpack.c.bf16 %v992_v32, %v976_v30 }
 0x145   : > { %v1023_v39 = vpack.c.bf16 %v991_v35, %v975_v33  ;;  %v1025_v40 = vpack.c.bf16 %v993_v36, %v977_v34  ;;  %v862_v41 = vpop.f32.mrb[24].mxu0  ;;  %v915_v42 = vpop.f32.mrb[24].mxu1  ;;  %v1408_v36 = vlaneseq }
 0x146   : > { %v863_v43 = vadd.f32 %v862_v41, %v2812_v48  ;;  %v916_v44 = vadd.f32 %v915_v42, %v2812_v48  ;;  %v864_v45 = vpop.f32.mrb[25].mxu0  ;;  %v917_v46 = vpop.f32.mrb[25].mxu1 }
 0x147   : > { %v865_v47 = vadd.f32 %v864_v45, %v2812_v48  ;;  %v918_v51 = vadd.f32 %v917_v46, %v2812_v48  ;;  %v866_v52 = vpop.f32.mrb[26].mxu0  ;;  %v919_v53 = vpop.f32.mrb[26].mxu1  ;;  %1207 = vmatprep.subr.bf16.mxu0 %v1023_v39  ;;  %1248 = vmatprep.subr.bf16.mxu1 %v1025_v40  ;;  %v2557_v39 = vmov 1.0   ;;  %v2558_v46 = vmov 0.0  }
 0x148   : > { %v867_v54 = vadd.f32 %v866_v52, %v2814_v49  ;;  %v920_v55 = vadd.f32 %v919_v53, %v2814_v49  ;;  %v868_v56 = vpop.f32.mrb[27].mxu0  ;;  %v921_v57 = vpop.f32.mrb[27].mxu1  ;;  %1208 = vmatpush1.bf16.msra.mxu0 %v1022_v37  ;;  %1249 = vmatpush1.bf16.msra.mxu1 %v1024_v38  ;;  %v946_v60 = vmax.f32 %v863_v43, 0.0  ;;  %v948_v61 = vmax.f32 %v916_v44, 0.0  ;;  %v1647_v43 = vld [vmem:[%s2926_s19] sm:$0xff] }
 0x149   : > { %v869_v58 = vadd.f32 %v868_v56, %v2814_v49  ;;  %v922_v59 = vadd.f32 %v921_v57, %v2814_v49  ;;  %v947_v1 = vmax.f32 %v865_v47, 0.0  ;;  %v949_v2 = vmax.f32 %v918_v51, 0.0  ;;  %v2933_v51 = vpop.permute.xlu0 %1034 }
 0x14a   : > { %v962_v62 = vmax.f32 %v867_v54, 0.0  ;;  %v964_v48 = vmax.f32 %v920_v55, 0.0  ;;  %v2913_v38 = vshrl.u32 %v1408_v36, 7  ;;  %v1770_v40 = vcombine.low %v2557_v39, %v2557_v39 }
 0x14b   : > { %v963_v3 = vmax.f32 %v869_v58, 0.0  ;;  %v965_v4 = vmax.f32 %v922_v59, 0.0  ;;  %2277 = vmatmul.mubr.msk.bf16.vlgmr.msra.gmra.mrb[40].mxu0 %vm1037_vm2, %v2845_v63  ;;  %2278 = vmatmul.mubr.msk.bf16.vlgmr.msra.gmra.mrb[40].mxu1 %vm1037_vm2, %v2845_v63  ;;  %vm1649_vm3 = vcmp.gt.s32.totalorder %v1647_v43, 0 }
 0x14c   : > { %v1010_v5 = vpack.c.bf16 %v962_v62, %v946_v60  ;;  %v1012_v6 = vpack.c.bf16 %v964_v48, %v948_v61  ;;  %1319 = vmatprep.mubr.bf16.mxu0 %v2555_v0  ;;  %1360 = vmatprep.mubr.bf16.mxu1 %v2555_v0  ;;  %v2289_v47 = vsel %vm1649_vm3, 1.0, %v2558_v46  ;;  %v1876_v56 = vsub.s32 0, %v2913_v38 }
 0x14d   : > { %v1011_v49 = vpack.c.bf16 %v963_v3, %v947_v1  ;;  %v1013_v7 = vpack.c.bf16 %v965_v4, %v949_v2  ;;  %v872_v8 = vpop.f32.mrb[28].mxu0  ;;  %v925_v9 = vpop.f32.mrb[28].mxu1 }
 0x14e   : > { %v873_v10 = vadd.f32 %v872_v8, %v2816_v50  ;;  %v926_v11 = vadd.f32 %v925_v9, %v2816_v50  ;;  %v874_v12 = vpop.f32.mrb[29].mxu0  ;;  %v927_v13 = vpop.f32.mrb[29].mxu1 }
 0x14f   : > { %v875_v15 = vadd.f32 %v874_v12, %v2816_v50  ;;  %v928_v16 = vadd.f32 %v927_v13, %v2816_v50  ;;  %v876_v17 = vpop.f32.mrb[30].mxu0  ;;  %v929_v18 = vpop.f32.mrb[30].mxu1  ;;  %1287 = vmatprep.subr.bf16.mxu0 %v1011_v49  ;;  %1328 = vmatprep.subr.bf16.mxu1 %v1013_v7 }
 0x150   : > { %v877_v0 = vadd.f32 %v876_v17, %v2826_v14  ;;  %v930_v19 = vadd.f32 %v929_v18, %v2826_v14  ;;  %v878_v20 = vpop.f32.mrb[31].mxu0  ;;  %v931_v21 = vpop.f32.mrb[31].mxu1  ;;  %1288 = vmatpush1.bf16.msra.mxu0 %v1010_v5  ;;  %1329 = vmatpush1.bf16.msra.mxu1 %v1012_v6  ;;  %v978_v24 = vmax.f32 %v873_v10, 0.0  ;;  %v980_v25 = vmax.f32 %v926_v11, 0.0 }
 0x151   : > { %v879_v22 = vadd.f32 %v878_v20, %v2826_v14  ;;  %v932_v23 = vadd.f32 %v931_v21, %v2826_v14  ;;  %v979_v27 = vmax.f32 %v875_v15, 0.0  ;;  %v981_v28 = vmax.f32 %v928_v16, 0.0 }
 0x152   : > { %v994_v26 = vmax.f32 %v877_v0, 0.0  ;;  %v996_v50 = vmax.f32 %v930_v19, 0.0  ;;  %v2556_v14 = vmov 1966171168   ;;  %v1880_v5 = vsub.s32 1, %v2913_v38 }
 0x153   : > { %v995_v29 = vmax.f32 %v879_v22, 0.0  ;;  %v997_v30 = vmax.f32 %v932_v23, 0.0  ;;  %v1406_v35 = vunpack.c.l.s4 %v2556_v14  ;;  %v1884_v0 = vsub.s32 2, %v2913_v38 }
 0x154   : > { %v1026_v31 = vpack.c.bf16 %v994_v26, %v978_v24  ;;  %v1028_v32 = vpack.c.bf16 %v996_v50, %v980_v25 }
 0x155   : > { %v1027_v33 = vpack.c.bf16 %v995_v29, %v979_v27  ;;  %v1029_v34 = vpack.c.bf16 %v997_v30, %v981_v28  ;;  %v1407_v37 = vunpack.c.0.s8 %v1406_v35  ;;  %v1888_v29 = vsub.s32 3, %v2913_v38 }
 0x157   : > { %1289 = vmatprep.subr.bf16.mxu0 %v1027_v33  ;;  %1330 = vmatprep.subr.bf16.mxu1 %v1029_v34  ;;  %v2919_v41 = vsub.s32 %v1407_v37, %v2913_v38 }
 0x158   : > { %1290 = vmatpush1.bf16.msra.mxu0 %v1026_v31  ;;  %1331 = vmatpush1.bf16.msra.mxu1 %v1028_v32  ;;  %v1892_v32 = vsub.s32 4, %v2913_v38 }
 0x159   : > { %v1780_v42 = vrot.slane %v1770_v40, %v2919_v41 }
 0x15b   : > { %2279 = vmatmul.mubr.msk.bf16.vlgmr.msra.gmra.mrb[44].mxu0 %vm1037_vm2, %v2845_v63  ;;  %2280 = vmatmul.mubr.msk.bf16.vlgmr.msra.gmra.mrb[44].mxu1 %vm1037_vm2, %v2845_v63  ;;  %v1802_v63 = vcombine.low %v1780_v42, %v1780_v42 }
 0x15d   : > { %v1810_v44 = vrot.slane %v1802_v63, %v2919_v41 }
 0x15f   : > { %v2930_v45 = vcombine.low %v1810_v44, %v1810_v44 }
 0x161   : > { %v2937_v55 = vmul.f32 %v2289_v47, %v2930_v45 }
 0x163   : > { %v2947_v10 = vrot.slane %v2937_v55, %v1876_v56  ;;  %v2955_v22 = vrot.slane %v2937_v55, %v1880_v5  ;;  %v2964_v28 = vrot.slane %v2937_v55, %v1884_v0  ;;  %v2973_v14 = vrot.slane %v2937_v55, %v1888_v29 }
 0x165   : > { %v2038_v25 = vsel %vm2037_vm4, %v2947_v10, 0.0  ;;  %v2039_v27 = vsel %vm2037_vm4, %v2955_v22, 0.0  ;;  %v2041_v31 = vsel %vm2037_vm4, %v2964_v28, 0.0 }
 0x166   : > { %v2040_v30 = vadd.f32 %v2039_v27, %v2038_v25 }
 0x168   : > { %v2042_v42 = vadd.f32 %v2041_v31, %v2040_v30 }
 0x1fe   : > { %v1075_v52 = vpop.f32.mrb[32].mxu0  ;;  %v1116_v53 = vpop.f32.mrb[32].mxu1 }
 0x1ff   : > { %v1076_v54 = vadd.f32 %v1075_v52, %v2933_v51  ;;  %v1117_v57 = vadd.f32 %v1116_v53, %v2933_v51  ;;  %v1077_v58 = vpop.f32.mrb[33].mxu0  ;;  %v1118_v59 = vpop.f32.mrb[33].mxu1  ;;  %v2043_v52 = vsel %vm2037_vm4, %v2973_v14, 0.0 }
 0x200   : > { %v1078_v60 = vadd.f32 %v1077_v58, %v2933_v51  ;;  %v1119_v61 = vadd.f32 %v1118_v59, %v2933_v51  ;;  %v1079_v62 = vpop.f32.mrb[34].mxu0  ;;  %v1120_v48 = vpop.f32.mrb[34].mxu1  ;;  %v2984_v59 = vrot.slane %v2937_v55, %v1892_v32 }
 0x201   : > { %v1519_v1 = vrot.slane %v1076_v54, 7  ;;  %v1521_v2 = vrot.slane %v1117_v57, 7  ;;  %v1080_v3 = vpop.f32.mrb[35].mxu0  ;;  %v1121_v4 = vpop.f32.mrb[35].mxu1 }
 0x202   : > { %v2281_v6 = vpack.c.bf16 %v1078_v60, %v1076_v54  ;;  %v1520_v49 = vrot.slane %v1078_v60, 7  ;;  %v2282_v7 = vpack.c.bf16 %v1119_v61, %v1117_v57  ;;  %v1522_v8 = vrot.slane %v1119_v61, 7 }
 0x203   : > { %v1551_v9 = vsub.f32 %v1076_v54, %v1519_v1  ;;  %v1553_v11 = vsub.f32 %v1117_v57, %v1521_v2  ;;  %v2045_v31 = vsel %vm2037_vm4, %v2984_v59, 0.0 }
 0x204   : > { %v1411_v12 = vrot.slane %v2281_v6, %v2919_v41  ;;  %v1552_v13 = vsub.f32 %v1078_v60, %v1520_v49  ;;  %v1418_v15 = vrot.slane %v2282_v7, %v2919_v41  ;;  %v1554_v16 = vsub.f32 %v1119_v61, %v1522_v8 }
 0x205   : > { %v1567_v17 = vsub.f32 0.0, %v1551_v9  ;;  %v1569_v18 = vsub.f32 0.0, %v1553_v11  ;;  %v1896_v60 = vsub.s32 5, %v2913_v38  ;;  %v2044_v49 = vadd.f32 %v2043_v52, %v2042_v42 }
 0x206   : > { %v1568_v19 = vsub.f32 0.0, %v1552_v13  ;;  %v1433_v20 = vcombine.low %v1411_v12, %v1418_v15  ;;  %v1570_v21 = vsub.f32 0.0, %v1554_v16 }
 0x207   : > { %v1583_v23 = vmul.f32 1.442695, %v1567_v17  ;;  %v1587_v24 = vmul.f32 1.442695, %v1569_v18 }
 0x208   : > { %v1585_v26 = vmul.f32 1.442695, %v1568_v19  ;;  %v1589_v50 = vmul.f32 1.442695, %v1570_v21  ;;  %v1441_v3 = vrot.slane %v1433_v20, %v2919_v41 }
 0x209   : > { %2376 = vpow2.f32 %v1583_v23 }
 0x20a   : > { %2378 = vpow2.f32 %v1587_v24 }
 0x20b   : > { %2380 = vpow2.f32 %v1585_v26 }
 0x20c   : > { %2382 = vpow2.f32 %v1589_v50 }
 0x20e   : > { %v1157_v33 = vpop.f32.mrb[36].mxu0  ;;  %v1198_v34 = vpop.f32.mrb[36].mxu1 }
 0x20f   : > { %v1158_v35 = vadd.f32 %v1157_v33, %v2933_v51  ;;  %v1199_v37 = vadd.f32 %v1198_v34, %v2933_v51  ;;  %v1159_v39 = vpop.f32.mrb[37].mxu0  ;;  %v1200_v40 = vpop.f32.mrb[37].mxu1  ;;  %v1648_v34 = vld [vmem:[%s2926_s19 + $0x8] sm:$0xff]  ;;  %s2474_s19 = sshll.u32 %s2559_s18, 4  ;;  %s2475_s19 = int_to_ptr.vmem [resolvable:$false] %s2474_s19 }
 0x210   : > { %v1160_v63 = vadd.f32 %v1159_v39, %v2933_v51  ;;  %v1201_v43 = vadd.f32 %v1200_v40, %v2933_v51  ;;  %v1161_v44 = vpop.f32.mrb[38].mxu0  ;;  %v1202_v47 = vpop.f32.mrb[38].mxu1  ;;  %v1900_v39 = vsub.s32 6, %v2913_v38  ;;  %v2046_v40 = vadd.f32 %v2045_v31, %v2044_v49  ;;  %s2476_s11 = scalar_lea.vmem %s2475_s19, 512  ;;  %p2477_p13 = scmp.lt.s32.totalorder %s2103_s8, %s2475_s19 }
 0x211   : > { %v1523_v53 = vrot.slane %v1158_v35, 7  ;;  %v1525_v54 = vrot.slane %v1199_v37, 7  ;;  %v1162_v57 = vpop.f32.mrb[39].mxu0  ;;  %v1203_v58 = vpop.f32.mrb[39].mxu1  ;;  %vm1650_vm5 = vcmp.gt.s32.totalorder %v1648_v34, 0  ;;  %p2478_p3 = scmp.lt.s32.totalorder %s2476_s11, %s2470_s23 }
 0x212   : > { %v2283_v61 = vpack.c.bf16 %v1160_v63, %v1158_v35  ;;  %v1524_v62 = vrot.slane %v1160_v63, 7  ;;  %v2284_v48 = vpack.c.bf16 %v1201_v43, %v1199_v37  ;;  %v1526_v1 = vrot.slane %v1201_v43, 7 }
 0x213   : > { %v2377_v2 = vpop.eup %2376  ;;  %v1555_v4 = vsub.f32 %v1158_v35, %v1523_v53  ;;  %v1557_v6 = vsub.f32 %v1199_v37, %v1525_v54  ;;  %v2998_v37 = vrot.slane %v2937_v55, %v1896_v60  ;;  %v3011_v54 = vrot.slane %v2937_v55, %v1900_v39  ;;  %p2479_p6 = por %p2478_p3, %p2477_p13 }
 0x214   : > { %v2379_v7 = vpop.eup %2378  ;;  %v1615_v8 = vadd.f32 1.0, %v2377_v2  ;;  %v1425_v9 = vrot.slane %v2283_v61, %v2919_v41  ;;  %v1556_v11 = vsub.f32 %v1160_v63, %v1524_v62  ;;  %v1432_v12 = vrot.slane %v2284_v48, %v2919_v41 }
 0x215   : > { %v2381_v13 = vpop.eup %2380  ;;  %v1617_v15 = vadd.f32 1.0, %v2379_v7  ;;  %v1571_v16 = vsub.f32 0.0, %v1555_v4  ;;  %v1573_v17 = vsub.f32 0.0, %v1557_v6  ;;  %v1558_v18 = vsub.f32 %v1201_v43, %v1526_v1  ;;  %p2480_p4 = pnand %p2479_p6, %p2473_p7 }
 0x216   : > { %v2383_v19 = vpop.eup %2382  ;;  %2384 = vrcp.f32 %v1615_v8  ;;  %v1616_v21 = vadd.f32 1.0, %v2381_v13  ;;  %v1572_v20 = vsub.f32 0.0, %v1556_v11  ;;  %v1434_v23 = vcombine.low %v1425_v9, %v1432_v12 }
 0x217   : > { %2386 = vrcp.f32 %v1617_v15  ;;  %v1618_v24 = vadd.f32 1.0, %v2383_v19  ;;  %v1591_v25 = vmul.f32 1.442695, %v1571_v16  ;;  %v1595_v26 = vmul.f32 1.442695, %v1573_v17 }
 0x218   : > { %2388 = vrcp.f32 %v1616_v21  ;;  %v1593_v50 = vmul.f32 1.442695, %v1572_v20  ;;  %v1448_v27 = vrot.slane %v1434_v23, %v2919_v41  ;;  %v1574_v30 = vsub.f32 0.0, %v1558_v18 }
 0x219   : > { %2390 = vrcp.f32 %v1618_v24  ;;  %v2047_v42 = vsel %vm2037_vm4, %v2998_v37, 0.0  ;;  %v1904_v57 = vsub.s32 7, %v2913_v38  ;;  %v2290_v2 = vsel %vm1650_vm5, 1.0, %v2558_v46 }
 0x21a   : > { %2392 = vpow2.f32 %v1591_v25  ;;  %v1597_v33 = vmul.f32 1.442695, %v1574_v30  ;;  %v1449_v35 = vcombine.low %v1441_v3, %v1448_v27  ;;  %v2048_v3 = vadd.f32 %v2047_v42, %v2046_v40 }
 0x21b   : > { %2394 = vpow2.f32 %v1595_v26 }
 0x21c   : > { %2396 = vpow2.f32 %v1593_v50  ;;  %1501 = vst [vmem:[%s3001_s20] sm:$0xff] %v1449_v35 }
 0x21d   : > { %2398 = vpow2.f32 %v1597_v33 }
 0x21e   : > { %v1239_v63 = vpop.f32.mrb[40].mxu0  ;;  %v1280_v43 = vpop.f32.mrb[40].mxu1 }
 0x21f   : > { %v1240_v44 = vadd.f32 %v1239_v63, %v2933_v51  ;;  %v1281_v47 = vadd.f32 %v1280_v43, %v2933_v51  ;;  %v1241_v52 = vpop.f32.mrb[41].mxu0  ;;  %v1282_v53 = vpop.f32.mrb[41].mxu1 }
 0x220   : > { %v2385_v58 = vpop.eup %2384  ;;  %v1242_v61 = vadd.f32 %v1241_v52, %v2933_v51  ;;  %v1283_v62 = vadd.f32 %v1282_v53, %v2933_v51  ;;  %v1243_v48 = vpop.f32.mrb[42].mxu0 }
 0x221   : > { %v1284_v1 = vpop.f32.mrb[42].mxu1  ;;  %v2387_v4 = vpop.eup %2386  ;;  %v1954_v6 = vmul.f32 %v2385_v58, %v2947_v10  ;;  %v2004_v49 = vsel %vm1970_vm6, %v2385_v58, 0.0  ;;  %v1527_v7 = vrot.slane %v1240_v44, 7  ;;  %v1529_v8 = vrot.slane %v1281_v47, 7 }
 0x222   : > { %v1244_v9 = vpop.f32.mrb[43].mxu0  ;;  %v1285_v11 = vpop.f32.mrb[43].mxu1  ;;  %v2007_v13 = vsel %vm1970_vm6, %v2387_v4, 0.0  ;;  %v2285_v15 = vpack.c.bf16 %v1242_v61, %v1240_v44  ;;  %v1528_v16 = vrot.slane %v1242_v61, 7  ;;  %v2286_v17 = vpack.c.bf16 %v1283_v62, %v1281_v47 }
 0x223   : > { %v2389_v12 = vpop.eup %2388  ;;  %v1971_v19 = vsel %vm1970_vm6, %v1954_v6, 0.0  ;;  %v1559_v21 = vsub.f32 %v1240_v44, %v1527_v7  ;;  %v1561_v20 = vsub.f32 %v1281_v47, %v1529_v8  ;;  %v1530_v63 = vrot.slane %v1283_v62, 7 }
 0x224   : > { %v2391_v18 = vpop.eup %2390  ;;  %v2005_v46 = vsel %vm1970_vm6, %v2389_v12, 0.0  ;;  %v3025_v25 = vrot.slane %v2285_v15, %v2919_v41  ;;  %v1560_v26 = vsub.f32 %v1242_v61, %v1528_v16  ;;  %v3028_v33 = vrot.slane %v2286_v17, %v2919_v41 }
 0x225   : > { %v2393_v10 = vpop.eup %2392  ;;  %v2006_v23 = vadd.f32 %v2005_v46, %v2004_v49  ;;  %v2009_v24 = vsel %vm1970_vm6, %v2391_v18, 0.0  ;;  %v1575_v30 = vsub.f32 0.0, %v1559_v21  ;;  %v1577_v31 = vsub.f32 0.0, %v1561_v20 }
 0x226   : > { %v2395_v50 = vpop.eup %2394  ;;  %v1619_v27 = vadd.f32 1.0, %v2393_v10  ;;  %v1576_v42 = vsub.f32 0.0, %v1560_v26  ;;  %v1482_v48 = vcombine.low %v3025_v25, %v3028_v33  ;;  %v1562_v1 = vsub.f32 %v1283_v62, %v1530_v63 }
 0x227   : > { %v2397_v34 = vpop.eup %2396  ;;  %v2008_v35 = vadd.f32 %v2007_v13, %v2006_v23  ;;  %v1621_v40 = vadd.f32 1.0, %v2395_v50  ;;  %v1599_v47 = vmul.f32 1.442695, %v1575_v30  ;;  %v1603_v52 = vmul.f32 1.442695, %v1577_v31 }
 0x228   : > { %v2399_v43 = vpop.eup %2398  ;;  %2400 = vrcp.f32 %v1619_v27  ;;  %v1620_v44 = vadd.f32 1.0, %v2397_v34  ;;  %v1601_v61 = vmul.f32 1.442695, %v1576_v42  ;;  %v1955_v6 = vmul.f32 %v2389_v12, %v2955_v22 }
 0x229   : > { %v2010_v53 = vadd.f32 %v2009_v24, %v2008_v35  ;;  %2402 = vrcp.f32 %v1621_v40  ;;  %v1622_v58 = vadd.f32 1.0, %v2399_v43  ;;  %v3034_v49 = vmul.f32 %v2290_v2, %v2930_v45 }
 0x22a   : > { %2404 = vrcp.f32 %v1620_v44  ;;  %v1956_v7 = vmul.f32 %v2387_v4, %v2964_v28  ;;  %v2049_v8 = vsel %vm2037_vm4, %v3011_v54, 0.0  ;;  %v1578_v9 = vsub.f32 0.0, %v1562_v1 }
 0x22b   : > { %2406 = vrcp.f32 %v1622_v58  ;;  %v1957_v11 = vmul.f32 %v2391_v18, %v2973_v14  ;;  %v1972_v13 = vsel %vm1970_vm6, %v1955_v6, 0.0  ;;  %v3044_v22 = vrot.slane %v2937_v55, %v1904_v57 }
 0x22c   : > { %2408 = vpow2.f32 %v1599_v47  ;;  %v1973_v62 = vadd.f32 %v1972_v13, %v1971_v19  ;;  %v1605_v45 = vmul.f32 1.442695, %v1578_v9  ;;  %v1974_v28 = vsel %vm1970_vm6, %v1956_v7, 0.0 }
 0x22d   : > { %2410 = vpow2.f32 %v1603_v52  ;;  %v2050_v2 = vadd.f32 %v2049_v8, %v2048_v3  ;;  %v3050_v14 = vrot.slane %v3034_v49, %v1876_v56  ;;  %v2051_v16 = vsel %vm2037_vm4, %v3044_v22, 0.0 }
 0x22e   : > { %2412 = vpow2.f32 %v1601_v61  ;;  %v1321_v4 = vpop.f32.mrb[44].mxu0  ;;  %v1362_v12 = vpop.f32.mrb[44].mxu1  ;;  %v1975_v15 = vadd.f32 %v1974_v28, %v1973_v62  ;;  %v1976_v3 = vsel %vm1970_vm6, %v1957_v11, 0.0 }
 0x22f   : > { %2414 = vpow2.f32 %v1605_v45  ;;  %v1322_v55 = vadd.f32 %v1321_v4, %v2933_v51  ;;  %v1363_v17 = vadd.f32 %v1362_v12, %v2933_v51  ;;  %v1323_v18 = vpop.f32.mrb[45].mxu0  ;;  %v1364_v19 = vpop.f32.mrb[45].mxu1  ;;  %v2052_v30 = vadd.f32 %v2051_v16, %v2050_v2 }
 0x230   : > { %v1324_v46 = vadd.f32 %v1323_v18, %v2933_v51  ;;  %v1365_v21 = vadd.f32 %v1364_v19, %v2933_v51  ;;  %v1325_v20 = vpop.f32.mrb[46].mxu0  ;;  %v1366_v56 = vpop.f32.mrb[46].mxu1  ;;  %v1977_v10 = vadd.f32 %v1976_v3, %v1975_v15  ;;  %v2053_v31 = vsel %vm2037_vm4, %v3050_v14, 0.0 }
 0x231   : > { %v1531_v24 = vrot.slane %v1322_v55, 7  ;;  %v1533_v26 = vrot.slane %v1363_v17, 7  ;;  %v1326_v50 = vpop.f32.mrb[47].mxu0  ;;  %v1367_v27 = vpop.f32.mrb[47].mxu1 }
 0x232   : > { %v2401_v23 = vpop.eup %2400  ;;  %v2287_v40 = vpack.c.bf16 %v1324_v46, %v1322_v55  ;;  %v1532_v42 = vrot.slane %v1324_v46, 7  ;;  %v2288_v63 = vpack.c.bf16 %v1365_v21, %v1363_v17  ;;  %v1534_v52 = vrot.slane %v1365_v21, 7 }
 0x233   : > { %v2403_v34 = vpop.eup %2402  ;;  %v2011_v35 = vsel %vm1970_vm6, %v2401_v23, 0.0  ;;  %v1563_v44 = vsub.f32 %v1322_v55, %v1531_v24  ;;  %v1565_v47 = vsub.f32 %v1363_v17, %v1533_v26 }
 0x234   : > { %v2405_v43 = vpop.eup %2404  ;;  %v2012_v51 = vadd.f32 %v2011_v35, %v2010_v53  ;;  %v1474_v1 = vrot.slane %v2287_v40, %v2919_v41  ;;  %v1564_v6 = vsub.f32 %v1324_v46, %v1532_v42  ;;  %v1481_v7 = vrot.slane %v2288_v63, %v2919_v41 }
 0x235   : > { %v2407_v58 = vpop.eup %2406  ;;  %v2013_v61 = vsel %vm1970_vm6, %v2405_v43, 0.0  ;;  %v1579_v9 = vsub.f32 0.0, %v1563_v44  ;;  %v1581_v11 = vsub.f32 0.0, %v1565_v47  ;;  %v1566_v13 = vsub.f32 %v1365_v21, %v1534_v52 }
 0x236   : > { %v2409_v8 = vpop.eup %2408  ;;  %v2014_v62 = vadd.f32 %v2013_v61, %v2012_v51  ;;  %v1490_v53 = vrot.slane %v1482_v48, %v2919_v41  ;;  %v1580_v2 = vsub.f32 0.0, %v1564_v6  ;;  %v1483_v4 = vcombine.low %v1474_v1, %v1481_v7 }
 0x237   : > { %v2411_v45 = vpop.eup %2410  ;;  %v1623_v28 = vadd.f32 1.0, %v2409_v8  ;;  %v1607_v16 = vmul.f32 1.442695, %v1579_v9  ;;  %v1582_v55 = vsub.f32 0.0, %v1566_v13  ;;  %v2015_v17 = vsel %vm1970_vm6, %v2403_v34, 0.0 }
 0x238   : > { %v2413_v12 = vpop.eup %2412  ;;  %v1625_v15 = vadd.f32 1.0, %v2411_v45  ;;  %v1611_v19 = vmul.f32 1.442695, %v1581_v11  ;;  %v1497_v3 = vrot.slane %v1483_v4, %v2919_v41  ;;  %v1609_v21 = vmul.f32 1.442695, %v1580_v2 }
 0x239   : > { %2416 = vrcp.f32 %v1623_v28  ;;  %v1624_v18 = vadd.f32 1.0, %v2413_v12  ;;  %v2415_v46 = vpop.eup %2414  ;;  %v2016_v20 = vadd.f32 %v2015_v17, %v2014_v62  ;;  %v2017_v25 = vsel %vm1970_vm6, %v2407_v58, 0.0 }
 0x23a   : > { %2418 = vrcp.f32 %v1625_v15  ;;  %v1626_v33 = vadd.f32 1.0, %v2415_v46  ;;  %v1958_v48 = vmul.f32 %v2401_v23, %v2984_v59  ;;  %v1959_v56 = vmul.f32 %v2405_v43, %v2998_v37 }
 0x23b   : > { %2420 = vrcp.f32 %v1624_v18  ;;  %v1613_v24 = vmul.f32 1.442695, %v1582_v55  ;;  %v2018_v26 = vadd.f32 %v2017_v25, %v2016_v20  ;;  %v1960_v50 = vmul.f32 %v2403_v34, %v3011_v54 }
 0x23c   : > { %2422 = vpow2.f32 %v1607_v16  ;;  %v1978_v41 = vsel %vm1970_vm6, %v1958_v48, 0.0  ;;  %v1980_v27 = vsel %vm1970_vm6, %v1959_v56, 0.0  ;;  %v1498_v35 = vcombine.low %v1490_v53, %v1497_v3 }
 0x23d   : > { %2424 = vrcp.f32 %v1626_v33  ;;  %v1979_v40 = vadd.f32 %v1978_v41, %v1977_v10  ;;  %v1913_v59 = vrot.slane %v3034_v49, %v1880_v5  ;;  %v1961_v37 = vmul.f32 %v2407_v58, %v3044_v22 }
 0x23e   : > { %2426 = vpow2.f32 %v1611_v19  ;;  %1502 = vst [vmem:[%s3001_s20 + $0x8] sm:$0xff] %v1498_v35  ;;  %v2054_v42 = vadd.f32 %v2053_v31, %v2052_v30  ;;  %v1982_v54 = vsel %vm1970_vm6, %v1960_v50, 0.0  ;;  %v1917_v63 = vrot.slane %v3034_v49, %v1884_v0 }
 0x23f   : > { %2428 = vpow2.f32 %v1609_v21  ;;  %v1981_v23 = vadd.f32 %v1980_v27, %v1979_v40  ;;  %v2055_v34 = vsel %vm2037_vm4, %v1913_v59, 0.0  ;;  %v1921_v5 = vrot.slane %v3034_v49, %v1888_v29 }
 0x240   : > { %2430 = vpow2.f32 %v1613_v24  ;;  %v1984_v22 = vsel %vm1970_vm6, %v1961_v37, 0.0  ;;  %v2056_v47 = vadd.f32 %v2055_v34, %v2054_v42  ;;  %v2057_v61 = vsel %vm2037_vm4, %v1917_v63, 0.0 }
 0x241   : > { %v1983_v10 = vadd.f32 %v1982_v54, %v1981_v23  ;;  %v2059_v19 = vsel %vm2037_vm4, %v1921_v5, 0.0  ;;  %v1925_v25 = vrot.slane %v3034_v49, %v1892_v32  ;;  %v1929_v24 = vrot.slane %v3034_v49, %v1896_v60 }
 0x242   : > { %v2058_v53 = vadd.f32 %v2057_v61, %v2056_v47  ;;  %v1933_v41 = vrot.slane %v3034_v49, %v1900_v39  ;;  %v1937_v37 = vrot.slane %v3034_v49, %v1904_v57 }
 0x243   : > { %v2417_v43 = vpop.eup %2416  ;;  %v1985_v31 = vadd.f32 %v1984_v22, %v1983_v10  ;;  %v2061_v56 = vsel %vm2037_vm4, %v1925_v25, 0.0  ;;  %v2063_v27 = vsel %vm2037_vm4, %v1929_v24, 0.0 }
 0x244   : > { %v2419_v51 = vpop.eup %2418  ;;  %v2019_v44 = vsel %vm1970_vm6, %v2417_v43, 0.0  ;;  %v1962_v30 = vmul.f32 %v2417_v43, %v3050_v14  ;;  %v2060_v48 = vadd.f32 %v2059_v19, %v2058_v53  ;;  %v2065_v54 = vsel %vm2037_vm4, %v1933_v41, 0.0 }
 0x245   : > { %v2421_v52 = vpop.eup %2420  ;;  %v2020_v58 = vadd.f32 %v2019_v44, %v2018_v26  ;;  %v1964_v7 = vmul.f32 %v2419_v51, %v1917_v63  ;;  %v2023_v14 = vsel %vm1970_vm6, %v2419_v51, 0.0  ;;  %v2067_v47 = vsel %vm2037_vm4, %v1937_v37, 0.0 }
 0x246   : > { %v2423_v0 = vpop.eup %2422  ;;  %v2021_v1 = vsel %vm1970_vm6, %v2421_v52, 0.0  ;;  %v1963_v6 = vmul.f32 %v2421_v52, %v1913_v59  ;;  %v1986_v29 = vsel %vm1970_vm6, %v1962_v30, 0.0  ;;  %v2062_v26 = vadd.f32 %v2061_v56, %v2060_v48 }
 0x247   : > { %v2425_v8 = vpop.eup %2424  ;;  %v1627_v9 = vadd.f32 1.0, %v2423_v0  ;;  %v2022_v11 = vadd.f32 %v2021_v1, %v2020_v58  ;;  %v1987_v13 = vadd.f32 %v1986_v29, %v1985_v31  ;;  %v1990_v18 = vsel %vm1970_vm6, %v1964_v7, 0.0 }
 0x248   : > { %v2427_v62 = vpop.eup %2426  ;;  %v1965_v45 = vmul.f32 %v2425_v8, %v1921_v5  ;;  %v1988_v28 = vsel %vm1970_vm6, %v1963_v6, 0.0  ;;  %v2025_v17 = vsel %vm1970_vm6, %v2425_v8, 0.0  ;;  %v2064_v42 = vadd.f32 %v2063_v27, %v2062_v26 }
 0x249   : > { %v2429_v2 = vpop.eup %2428  ;;  %2432 = vrcp.f32 %v1627_v9  ;;  %v1629_v4 = vadd.f32 1.0, %v2427_v62  ;;  %v2024_v12 = vadd.f32 %v2023_v14, %v2022_v11  ;;  %v1989_v15 = vadd.f32 %v1988_v28, %v1987_v13 }
 0x24a   : > { %v2431_v16 = vpop.eup %2430  ;;  %v1628_v55 = vadd.f32 1.0, %v2429_v2  ;;  %v1992_v20 = vsel %vm1970_vm6, %v1965_v45, 0.0  ;;  %v2066_v44 = vadd.f32 %v2065_v54, %v2064_v42 }
 0x24b   : > { %2434 = vrcp.f32 %v1629_v4  ;;  %v1630_v3 = vadd.f32 1.0, %v2431_v16  ;;  %v2026_v46 = vadd.f32 %v2025_v17, %v2024_v12  ;;  %v1991_v21 = vadd.f32 %v1990_v18, %v1989_v15 }
 0x24c   : > { %2436 = vrcp.f32 %v1628_v55  ;;  %v2068_v1 = vadd.f32 %v2067_v47, %v2066_v44 }
 0x24d   : > { %2438 = vrcp.f32 %v1630_v3  ;;  %v1993_v33 = vadd.f32 %v1992_v20, %v1991_v21 }
 0x253   : > { %v2433_v50 = vpop.eup %2432 }
 0x254   : > { %v2027_v35 = vsel %vm1970_vm6, %v2433_v50, 0.0  ;;  %v1966_v40 = vmul.f32 %v2433_v50, %v1925_v25 }
 0x255   : > { %v2435_v32 = vpop.eup %2434  ;;  %v2028_v59 = vadd.f32 %v2027_v35, %v2026_v46 }
 0x256   : > { %v2437_v23 = vpop.eup %2436  ;;  %v1994_v60 = vsel %vm1970_vm6, %v1966_v40, 0.0  ;;  %v1968_v10 = vmul.f32 %v2435_v32, %v1933_v41  ;;  %v2031_v22 = vsel %vm1970_vm6, %v2435_v32, 0.0 }
 0x257   : > { %v2439_v34 = vpop.eup %2438  ;;  %v2029_v39 = vsel %vm1970_vm6, %v2437_v23, 0.0  ;;  %v1967_v63 = vmul.f32 %v2437_v23, %v1929_v24  ;;  %v1995_v43 = vadd.f32 %v1994_v60, %v1993_v33 }
 0x258   : > { %v2030_v5 = vadd.f32 %v2029_v39, %v2028_v59  ;;  %v1969_v51 = vmul.f32 %v2439_v34, %v1937_v37  ;;  %v2033_v30 = vsel %vm1970_vm6, %v2439_v34, 0.0  ;;  %v1998_v31 = vsel %vm1970_vm6, %v1968_v10, 0.0 }
 0x259   : > { %v1996_v38 = vsel %vm1970_vm6, %v1967_v63, 0.0 }
 0x25a   : > { %v2032_v57 = vadd.f32 %v2031_v22, %v2030_v5  ;;  %v1997_v49 = vadd.f32 %v1996_v38, %v1995_v43  ;;  %v2000_v61 = vsel %vm1970_vm6, %v1969_v51, 0.0 }
 0x25c   : > { %v2034_v52 = vadd.f32 %v2033_v30, %v2032_v57  ;;  %v1999_v58 = vadd.f32 %v1998_v31, %v1997_v49 }
 0x25e   : > { %2035 = vadd.xlane.f32.xlu0 %v2034_v52  ;;  %v2001_v0 = vadd.f32 %v2000_v61, %v1999_v58 }
 0x260   : > { %2002 = vadd.xlane.f32.xlu1 %v2001_v0 }
 0x262   : > { %2069 = vadd.xlane.f32.xlu0 %v2068_v1 }
 0x263   : > { %2483 = shalt.err (!%p2480_p4)
}
 0x264   : > { %s2484_s27 = scalar_lea.hbm %s3130_s21, 256  ;;  %s2488_s13 = scalar_lea.hbm %s3185_s6, 512 }
 0x265   : > { %p2485_p10 = scmp.ne.s32.totalorder %s3130_s21, %s2484_s27  ;;  %p2489_p2 = scmp.lt.u32.totalorder %s3130_s21, %s3185_s6 }
 0x266   : > { %p2490_p5 = scmp.lt.u32.totalorder %s2488_s13, %s2484_s27  ;;  %p2492_p9 = scmp.lt.u32.totalorder %s2484_s27, %s3130_s21 }
 0x267   : > { %p2486_p12 = pnand %p2485_p10, %p3195_p11 }
 0x268   : > { %p2491_p8 = por %p2490_p5, %p2489_p2 }
 0x269   : > { %p2487_p1 = pneg %p2486_p12 }
 0x26a   : > { %p2493_p0 = por %p2492_p9, %p2491_p8 }
 0x26c   : > { %p2494_p7 = pnand %p2493_p0, %p2487_p1 }
 0x26e   : > { %2497 = shalt.err (!%p2494_p7)
}
 0x26f   : > { %2300 = dma.vmem_to_hbm [thread:$0]  (%p3195_p11), %s2103_s8, 256, %s3130_s21, %s2079_s17   ;;  %v1657_v6 = vand.u32 127, %v1408_v36 }
 0x270   : > { %s2246_s23 = sshll.u32 %s2916_s10, 2 }
 0x271   : > { %vm2071_vm7 = vcmp.eq.s32.totalorder %v1657_v6, 0  ;;  %s366_s11 = scalar_lea.vmem %s3186_s7, %s2246_s23 }
 0x2eb   : > { %v2036_v7 = vpop.xlane.xlu0 %2035 }
 0x2ec   : > { %v2074_v29 = vsel %vm2071_vm7, %v2036_v7, 0.0 }
 0x2ed   : > { %2075 = vst [vmem:[%s366_s11] sm:$0x2] %v2074_v29  ;;  %v2003_v8 = vpop.xlane.xlu1 %2002 }
 0x2ee   : > { %v2072_v9 = vsel %vm2071_vm7, %v2003_v8, 0.0 }
 0x2ef   : > { %2073 = vst [vmem:[%s366_s11 - $0x1] sm:$0x2] %v2072_v9  ;;  %v2070_v11 = vpop.xlane.xlu0 %2069 }
 0x2f0   : > { %v2076_v13 = vsel %vm2071_vm7, %v2070_v11, 0.0 }
 0x2f1   : > { %2077 = vst [vmem:[%s366_s11 + $0x2] sm:$0x1] %v2076_v13 }
 0x2f2 PF: > { %s2117_s14 = sand.u32 1, %s2532_s24   ;;  %p3196_p11 = scmp.ne.s32.totalorder %s3191_s16, 0 }
 0x2f3   : > { %p3197_p13 = scmp.ge.s32.totalorder %s2552_s29, 2  ;;  %s2118_s10 = scalar_lea.sflag [#allocation4], %s2117_s14 }
 0x2f5   : > { %p2307_p3 = pnand %p3197_p13, %p3196_p11 }
 0x2f7   : > { %2527 = dma.done.wait (!%p2307_p3), %s2118_s10, 256  }
 0x2f8   : > { %2529 = vsyncadd (!%p2307_p3), %s2118_s10, 4294967040  ;;  %s24_s29 = sadd.s32 1, %s2552_s29   ;;  %s3198_s24 = smov %s2536_s25 }
 0x2f9   : > { %p21_p6 = scmp.ge.s32.totalorder %s24_s29, 4   ;;  %s3199_s25 = smov %s2540_s26 }
 0x2fa   : > { %s3200_s26 = smov %s2656_s15  ;;  %s3201_s27 = smov %s2548_s28 }
 0x2fb   : > { %s3202_s28 = smov %s3204_s9  ;;  %23 = sbr.rel (!%p21_p6) target bundleno = 6 (0x6), region = 104 }
 0x302   :  { %2133 = vsyncpa [#allocation3], 1 }
 0x303   :  { %2135 = vsyncpa [#allocation3 + $0x1], 1 }
 0x304   :  { %2136 = vsyncpa [#allocation4], 1 }
 0x305   :  { %2138 = vsyncpa [#allocation4 + $0x1], 1 }

</bundles_post_ra>
